<compile_context>
chip_gen: v5e
topology: v5e:2x2
jax: 0.10.0
libtpu: 0.0.40
codegen_flags: <defaults>
</compile_context>

<pallas_src>
import math
from functools import partial

import jax
import jax.numpy as jnp
from jax.experimental import pallas as pl
from jax.experimental.pallas import tpu as pltpu


def _round_up(x, m):
    return ((x + m - 1) // m) * m


def _tpu_memory_and_cores():
    """(per-core VMEM capacity, #TensorCores per chip) with safe fallbacks."""
    vmem_cap = 128 << 20
    try:
        info = pltpu.get_tpu_info()
        cap = int(getattr(info, "vmem_capacity_bytes", 0) or 0)
        if cap > 0:
            vmem_cap = cap
    except Exception:
        pass
    # v7x exposes 64 MiB VMEM per TensorCore and has 2 TCs/chip; v5e/v6e have
    # 128 MiB and a single TC.  Use VMEM size as the generation heuristic.
    num_tc = 2 if vmem_cap <= (64 << 20) else 1
    return vmem_cap, num_tc


def _mha_kernel(q_in_ref, k_in_ref, v_in_ref,
                wq_ref, bq_ref, wk_ref, bk_ref,
                wv_ref, bv_ref, wo_ref, bo_ref,
                out_ref, *, num_heads, d_k, sk_valid):
    bt, sq, dq_in = q_in_ref.shape
    _, sk, dk_in = k_in_ref.shape
    dv_in = v_in_ref.shape[-1]
    d_model = num_heads * d_k
    cdt = wq_ref.dtype   # MXU operand dtype (f32, or bf16 if caller casts weights)

    # ---- projections fused over the batch block: (bt*S, feat) @ (feat, d_model) ----
    xq = q_in_ref[...].reshape(bt * sq, dq_in).astype(cdt)
    xk = k_in_ref[...].reshape(bt * sk, dk_in).astype(cdt)
    xv = v_in_ref[...].reshape(bt * sk, dv_in).astype(cdt)

    # Biases are (1, d_model); broadcast once here, never inside the head loop.
    q = jnp.dot(xq, wq_ref[...], preferred_element_type=jnp.float32) + bq_ref[...]
    k = jnp.dot(xk, wk_ref[...], preferred_element_type=jnp.float32) + bk_ref[...]
    v = jnp.dot(xv, wv_ref[...], preferred_element_type=jnp.float32) + bv_ref[...]

    # Fold the 1/sqrt(d_k) scale into q once instead of scaling every score tile.
    q = (q * (1.0 / math.sqrt(d_k))).astype(cdt).reshape(bt, sq, d_model)
    k = k.astype(cdt).reshape(bt, sk, d_model)
    v = v.astype(cdt).reshape(bt, sk, d_model)

    # Static key-padding correction (only when Sk was padded to a sublane multiple).
    if sk_valid < sk:
        kpos = jax.lax.broadcasted_iota(jnp.int32, (1, 1, sk), 2)
        neg = jnp.where(kpos < sk_valid, 0.0, -1e30).astype(jnp.float32)
    else:
        neg = None

    # ---- per-head attention, batched over the whole batch block ----
    # Only one (bt, Sq, Sk) score tile is live at a time (loop over heads only).
    # TODO(synk): key_padding_mask / attn_mask (None in the default forward
    # path) would be applied here via jnp.where(mask, -inf, s).
    ctx_heads = []
    for h in range(num_heads):
        lo = h * d_k
        qh = q[:, :, lo:lo + d_k]                      # (bt, Sq, d_k)
        kh = k[:, :, lo:lo + d_k]                      # (bt, Sk, d_k)
        vh = v[:, :, lo:lo + d_k]                      # (bt, Sk, d_k)
        s = jnp.einsum('bqd,bkd->bqk', qh, kh,
                       preferred_element_type=jnp.float32)   # (bt, Sq, Sk) f32
        if neg is not None:
            s = s + neg
        m = jnp.max(s, axis=-1, keepdims=True)
        p = jnp.exp(s - m)
        denom = jnp.sum(p, axis=-1, keepdims=True)
        attn = p * pl.reciprocal(denom, approx=True)   # EUP vrcp slot
        ctx_heads.append(jnp.einsum('bqk,bkd->bqd', attn.astype(cdt), vh,
                                    preferred_element_type=jnp.float32))

    # Assemble all heads into one lane-dense slab (no masked sub-128 stores).
    ctx = jnp.concatenate(ctx_heads, axis=-1)          # (bt, Sq, d_model)
    ctx = ctx.reshape(bt * sq, d_model).astype(cdt)

    # ---- output projection on the whole (bt*Sq, d_model) slab ----
    out = jnp.dot(ctx, wo_ref[...], preferred_element_type=jnp.float32) + bo_ref[...]
    out_ref[...] = out.reshape(out_ref.shape).astype(out_ref.dtype)


def multi_head_attention(query, key, value, params, *, num_heads,
                         block_batch=None, compute_dtype=None):
    """query: (B, Sq, d_model), key: (B, Sk, kdim), value: (B, Sk, vdim)."""
    B, Sq, d_model = query.shape
    _, Sk, kdim = key.shape
    vdim = value.shape[-1]
    assert d_model % num_heads == 0
    d_k = d_model // num_heads
    out_dtype = query.dtype

    # Pad sequence lengths to sublane multiples so the in-kernel row merges
    # (bt, S, d) -> (bt*S, d) are free (no VMEM copies).  Padded keys are
    # masked inside the kernel; padded query rows are sliced off below.
    Sq_p = _round_up(Sq, 8)
    Sk_p = _round_up(Sk, 8)
    if Sq_p != Sq:
        query = jnp.pad(query, ((0, 0), (0, Sq_p - Sq), (0, 0)))
    if Sk_p != Sk:
        key = jnp.pad(key, ((0, 0), (0, Sk_p - Sk), (0, 0)))
        value = jnp.pad(value, ((0, 0), (0, Sk_p - Sk), (0, 0)))

    # Host-side pre-transpose (free, one-time): kernel computes x @ W_t + b.
    # NOTE: pass compute_dtype=jnp.bfloat16 on v6e/v7x for ~2-4x MXU throughput
    # (accumulation stays f32); the demo keeps f32 for bit-close parity.
    cdt = jnp.dtype(compute_dtype) if compute_dtype is not None else query.dtype
    wq_t = params['wq'].T.astype(cdt)
    wk_t = params['wk'].T.astype(cdt)
    wv_t = params['wv'].T.astype(cdt)
    wo_t = params['wo'].T.astype(cdt)
    # Biases as 2-D (1, d_model) rows; kept f32 (added to f32 accumulators).
    bq2, bk2, bv2, bo2 = (params[n].reshape(1, -1).astype(jnp.float32)
                          for n in ('bq', 'bk', 'bv', 'bo'))

    # ---- chip-aware VMEM budget and batch blocking ----
    vmem_cap, num_tc = _tpu_memory_and_cores()
    vmem_ceiling = max(int(vmem_cap * 0.85), 16 << 20)

    in_b = jnp.dtype(query.dtype).itemsize
    out_b = jnp.dtype(out_dtype).itemsize
    wb = jnp.dtype(cdt).itemsize
    n_weight_elems = wq_t.size + wk_t.size + wv_t.size + wo_t.size + 4 * d_model

    def footprint(bt, weight_bufs=1):
        act_in = 2 * bt * (Sq_p * d_model + Sk_p * kdim + Sk_p * vdim) * in_b
        act_out = 2 * bt * Sq_p * d_model * out_b
        weights = weight_bufs * n_weight_elems * wb
        temps = (bt * (Sq_p + 2 * Sk_p) * d_model      # q, k, v (f32)
                 + bt * Sq_p * d_model                  # ctx slab (f32)
                 + bt * Sq_p * Sk_p) * 4                # one head's score tile
        return act_in + act_out + weights + temps + (4 << 20)

    if block_batch is None:
        # Feed the 256-wide MXU (v6e/v7x): >=256 projection rows per grid step,
        # then shrink until the block fits the per-core VMEM budget.
        block_batch = max(1, min(B, max(1, 256 // Sq_p)))
        while block_batch > 1 and footprint(block_batch) > vmem_ceiling:
            block_batch = (block_batch + 1) // 2
        # Only v7x has 2 TensorCores; keep >=2 grid steps there so the
        # "parallel" batch axis can shard across cores.  On v5e/v6e a split
        # would just halve tile size for no gain.
        if num_tc > 1 and B >= 2 and pl.cdiv(B, block_batch) < 2:
            block_batch = pl.cdiv(B, 2)
    bt = block_batch
    grid = (pl.cdiv(B, bt),)

    kernel = partial(_mha_kernel, num_heads=num_heads, d_k=d_k, sk_valid=Sk)

    def build_and_call(single_buffer_params):
        # Weight/bias blocks are constant across the grid; single-buffer them
        # so they don't burn 2x the VMEM (biggest win on v7x's 64 MiB).
        def const_spec(shape):
            if single_buffer_params:
                return pl.BlockSpec(shape, lambda b: (0, 0),
                                    pipeline_mode=pl.Buffered(1))
            return pl.BlockSpec(shape, lambda b: (0, 0))

        vmem_limit = int(min(max(footprint(bt, 1 if single_buffer_params else 2),
                                 16 << 20),
                             vmem_ceiling))

        return pl.pallas_call(
            kernel,
            out_shape=jax.ShapeDtypeStruct((B, Sq_p, d_model), out_dtype),
            grid_spec=pltpu.PrefetchScalarGridSpec(
                num_scalar_prefetch=0,
                grid=grid,
                in_specs=[
                    pl.BlockSpec((bt, Sq_p, d_model), lambda b: (b, 0, 0)),
                    pl.BlockSpec((bt, Sk_p, kdim), lambda b: (b, 0, 0)),
                    pl.BlockSpec((bt, Sk_p, vdim), lambda b: (b, 0, 0)),
                    const_spec((d_model, d_model)),   # wq^T
                    const_spec((1, d_model)),         # bq
                    const_spec((kdim, d_model)),      # wk^T
                    const_spec((1, d_model)),         # bk
                    const_spec((vdim, d_model)),      # wv^T
                    const_spec((1, d_model)),         # bv
                    const_spec((d_model, d_model)),   # wo^T
                    const_spec((1, d_model)),         # bo
                ],
                out_specs=pl.BlockSpec((bt, Sq_p, d_model), lambda b: (b, 0, 0)),
            ),
            compiler_params=pltpu.CompilerParams(
                dimension_semantics=("parallel",),
                vmem_limit_bytes=vmem_limit),
        )(query, key, value, wq_t, bq2, wk_t, bk2, wv_t, bv2, wo_t, bo2)

    try:
        out = build_and_call(True)
    except Exception:
        # Fallback for jax versions without BlockSpec(pipeline_mode=...):
        # identical kernel, default double-buffered parameter blocks.
        out = build_and_call(False)

    if Sq_p != Sq:
        out = out[:, :Sq, :]
    return out


def reference_mha(query, key, value, params, *, num_heads):
    """Pure-JAX reference mirroring the PyTorch forward."""
    B, Sq, d_model = query.shape
    Sk = key.shape[1]
    d_k = d_model // num_heads
    lin = lambda x, w, b: x @ w.T + b
    q = lin(query, params['wq'], params['bq'])
    k = lin(key, params['wk'], params['bk'])
    v = lin(value, params['wv'], params['bv'])
    q = q.reshape(B, Sq, num_heads, d_k).transpose(0, 2, 1, 3)
    k = k.reshape(B, Sk, num_heads, d_k).transpose(0, 2, 1, 3)
    v = v.reshape(B, Sk, num_heads, d_k).transpose(0, 2, 1, 3)
    scores = jnp.einsum('bhqd,bhkd->bhqk', q, k) / math.sqrt(d_k)
    attn = jax.nn.softmax(scores, axis=-1)
    ctx = jnp.einsum('bhqk,bhkd->bhqd', attn, v)
    ctx = ctx.transpose(0, 2, 1, 3).reshape(B, Sq, d_model)
    return lin(ctx, params['wo'], params['bo'])


def init_params(key, d_model, kdim, vdim):
    """Deterministic nn.Linear-style init (uniform +- 1/sqrt(fan_in))."""
    ks = jax.random.split(key, 8)
    def lin_init(kw, kb, out_f, in_f):
        bound = 1.0 / math.sqrt(in_f)
        w = jax.random.uniform(kw, (out_f, in_f), jnp.float32, -bound, bound)
        b = jax.random.uniform(kb, (out_f,), jnp.float32, -bound, bound)
        return w, b
    wq, bq = lin_init(ks[0], ks[1], d_model, d_model)
    wk, bk = lin_init(ks[2], ks[3], d_model, kdim)
    wv, bv = lin_init(ks[4], ks[5], d_model, vdim)
    wo, bo = lin_init(ks[6], ks[7], d_model, d_model)
    return dict(wq=wq, bq=bq, wk=wk, bk=bk, wv=wv, bv=bv, wo=wo, bo=bo)


if __name__ == "__main__":
    B, Sq, Sk = 2, 8, 8
    d_model, num_heads = 32, 4
    kdim = vdim = d_model

    root = jax.random.PRNGKey(0)
    kp, kq, kk, kv = jax.random.split(root, 4)
    params = init_params(kp, d_model, kdim, vdim)

    query = jax.random.normal(kq, (B, Sq, d_model), jnp.float32)
    key_in = jax.random.normal(kk, (B, Sk, kdim), jnp.float32)
    value = jax.random.normal(kv, (B, Sk, vdim), jnp.float32)

    out = multi_head_attention(query, key_in, value, params, num_heads=num_heads)
    out = jax.block_until_ready(out)

    ref = reference_mha(query, key_in, value, params, num_heads=num_heads)
    assert out.shape == (B, Sq, d_model)
    # slightly looser than 1e-4 because of the EUP approx-reciprocal softmax denom
    assert jnp.allclose(out, ref, atol=2e-3, rtol=2e-3), "mismatch vs reference"

    print("KERNEL_OK")
</pallas_src>

<mosaic_0001>
module attributes {stable_mosaic.version = 11 : i64} {
  func.func @_mha_kernel(%arg0: i32, %arg1: memref<2x8x32xf32, #tpu.memory_space<vmem>>, %arg2: memref<2x8x32xf32, #tpu.memory_space<vmem>>, %arg3: memref<2x8x32xf32, #tpu.memory_space<vmem>>, %arg4: memref<32x32xf32, #tpu.memory_space<vmem>>, %arg5: memref<1x32xf32, #tpu.memory_space<vmem>>, %arg6: memref<32x32xf32, #tpu.memory_space<vmem>>, %arg7: memref<1x32xf32, #tpu.memory_space<vmem>>, %arg8: memref<32x32xf32, #tpu.memory_space<vmem>>, %arg9: memref<1x32xf32, #tpu.memory_space<vmem>>, %arg10: memref<32x32xf32, #tpu.memory_space<vmem>>, %arg11: memref<1x32xf32, #tpu.memory_space<vmem>>, %arg12: memref<2x8x32xf32, #tpu.memory_space<vmem>>) attributes {dimension_semantics = [#tpu.dimension_semantics<parallel>], iteration_bounds = array<i64: 1>, scalar_prefetch = 0 : i64, scratch_operands = 0 : i64, tpu.core_type = #tpu.core_type<tc>, window_params = [{transform_indices = @transform_0, window_bounds = array<i64: 2, 8, 32>}, {transform_indices = @transform_1, window_bounds = array<i64: 2, 8, 32>}, {transform_indices = @transform_2, window_bounds = array<i64: 2, 8, 32>}, {pipeline_mode = #tpu.pipeline_mode<synchronous>, transform_indices = @transform_3, window_bounds = array<i64: 32, 32>}, {pipeline_mode = #tpu.pipeline_mode<synchronous>, transform_indices = @transform_4, window_bounds = array<i64: 1, 32>}, {pipeline_mode = #tpu.pipeline_mode<synchronous>, transform_indices = @transform_5, window_bounds = array<i64: 32, 32>}, {pipeline_mode = #tpu.pipeline_mode<synchronous>, transform_indices = @transform_6, window_bounds = array<i64: 1, 32>}, {pipeline_mode = #tpu.pipeline_mode<synchronous>, transform_indices = @transform_7, window_bounds = array<i64: 32, 32>}, {pipeline_mode = #tpu.pipeline_mode<synchronous>, transform_indices = @transform_8, window_bounds = array<i64: 1, 32>}, {pipeline_mode = #tpu.pipeline_mode<synchronous>, transform_indices = @transform_9, window_bounds = array<i64: 32, 32>}, {pipeline_mode = #tpu.pipeline_mode<synchronous>, transform_indices = @transform_10, window_bounds = array<i64: 1, 32>}, {transform_indices = @transform_11, window_bounds = array<i64: 2, 8, 32>}]} {
    %c0 = arith.constant 0 : index
    %c0_0 = arith.constant 0 : index
    %c0_1 = arith.constant 0 : index
    %0 = vector.load %arg1[%c0, %c0_0, %c0_1] : memref<2x8x32xf32, #tpu.memory_space<vmem>>, vector<2x8x32xf32>
    %1 = vector.shape_cast %0 : vector<2x8x32xf32> to vector<16x32xf32>
    %c0_2 = arith.constant 0 : index
    %c0_3 = arith.constant 0 : index
    %c0_4 = arith.constant 0 : index
    %2 = vector.load %arg2[%c0_2, %c0_3, %c0_4] : memref<2x8x32xf32, #tpu.memory_space<vmem>>, vector<2x8x32xf32>
    %3 = vector.shape_cast %2 : vector<2x8x32xf32> to vector<16x32xf32>
    %c0_5 = arith.constant 0 : index
    %c0_6 = arith.constant 0 : index
    %c0_7 = arith.constant 0 : index
    %4 = vector.load %arg3[%c0_5, %c0_6, %c0_7] : memref<2x8x32xf32, #tpu.memory_space<vmem>>, vector<2x8x32xf32>
    %5 = vector.shape_cast %4 : vector<2x8x32xf32> to vector<16x32xf32>
    %c0_8 = arith.constant 0 : index
    %c0_9 = arith.constant 0 : index
    %6 = vector.load %arg4[%c0_8, %c0_9] : memref<32x32xf32, #tpu.memory_space<vmem>>, vector<32x32xf32>
    %cst = arith.constant dense<0.000000e+00> : vector<16x32xf32>
    %7 = tpu.matmul %1, %6, %cst {dimension_numbers = #tpu.dot_dimension_numbers<[1], [0], [0], [1], [0, 0, 1, 1], [], []>} : vector<16x32xf32>, vector<32x32xf32>, vector<16x32xf32> -> vector<16x32xf32>
    %c0_10 = arith.constant 0 : index
    %c0_11 = arith.constant 0 : index
    %8 = vector.load %arg5[%c0_10, %c0_11] : memref<1x32xf32, #tpu.memory_space<vmem>>, vector<1x32xf32>
    %9 = vector.broadcast %8 : vector<1x32xf32> to vector<16x32xf32>
    %10 = arith.addf %7, %9 : vector<16x32xf32>
    %c0_12 = arith.constant 0 : index
    %c0_13 = arith.constant 0 : index
    %11 = vector.load %arg6[%c0_12, %c0_13] : memref<32x32xf32, #tpu.memory_space<vmem>>, vector<32x32xf32>
    %cst_14 = arith.constant dense<0.000000e+00> : vector<16x32xf32>
    %12 = tpu.matmul %3, %11, %cst_14 {dimension_numbers = #tpu.dot_dimension_numbers<[1], [0], [0], [1], [0, 0, 1, 1], [], []>} : vector<16x32xf32>, vector<32x32xf32>, vector<16x32xf32> -> vector<16x32xf32>
    %c0_15 = arith.constant 0 : index
    %c0_16 = arith.constant 0 : index
    %13 = vector.load %arg7[%c0_15, %c0_16] : memref<1x32xf32, #tpu.memory_space<vmem>>, vector<1x32xf32>
    %14 = vector.broadcast %13 : vector<1x32xf32> to vector<16x32xf32>
    %15 = arith.addf %12, %14 : vector<16x32xf32>
    %c0_17 = arith.constant 0 : index
    %c0_18 = arith.constant 0 : index
    %16 = vector.load %arg8[%c0_17, %c0_18] : memref<32x32xf32, #tpu.memory_space<vmem>>, vector<32x32xf32>
    %cst_19 = arith.constant dense<0.000000e+00> : vector<16x32xf32>
    %17 = tpu.matmul %5, %16, %cst_19 {dimension_numbers = #tpu.dot_dimension_numbers<[1], [0], [0], [1], [0, 0, 1, 1], [], []>} : vector<16x32xf32>, vector<32x32xf32>, vector<16x32xf32> -> vector<16x32xf32>
    %c0_20 = arith.constant 0 : index
    %c0_21 = arith.constant 0 : index
    %18 = vector.load %arg9[%c0_20, %c0_21] : memref<1x32xf32, #tpu.memory_space<vmem>>, vector<1x32xf32>
    %19 = vector.broadcast %18 : vector<1x32xf32> to vector<16x32xf32>
    %20 = arith.addf %17, %19 : vector<16x32xf32>
    %cst_22 = arith.constant 0.353553385 : f32
    %21 = vector.broadcast %cst_22 : f32 to vector<16x32xf32>
    %22 = arith.mulf %10, %21 : vector<16x32xf32>
    %23 = vector.shape_cast %22 : vector<16x32xf32> to vector<2x8x32xf32>
    %24 = vector.shape_cast %15 : vector<16x32xf32> to vector<2x8x32xf32>
    %25 = vector.shape_cast %20 : vector<16x32xf32> to vector<2x8x32xf32>
    %26 = vector.extract_strided_slice %23 {offsets = [0, 0, 0], sizes = [2, 8, 8], strides = [1, 1, 1]} : vector<2x8x32xf32> to vector<2x8x8xf32>
    %27 = vector.extract_strided_slice %24 {offsets = [0, 0, 0], sizes = [2, 8, 8], strides = [1, 1, 1]} : vector<2x8x32xf32> to vector<2x8x8xf32>
    %28 = vector.extract_strided_slice %25 {offsets = [0, 0, 0], sizes = [2, 8, 8], strides = [1, 1, 1]} : vector<2x8x32xf32> to vector<2x8x8xf32>
    "tpu.trace_start"() <{level = 10 : i32, message = "bqd,bkd->bqk"}> : () -> ()
    %cst_23 = arith.constant dense<0.000000e+00> : vector<2x8x8xf32>
    %29 = tpu.matmul %26, %27, %cst_23 {dimension_numbers = #tpu.dot_dimension_numbers<[2], [2], [1], [1], [0, 0, 0, 1, 1, 1], [0], [0]>} : vector<2x8x8xf32>, vector<2x8x8xf32>, vector<2x8x8xf32> -> vector<2x8x8xf32>
    "tpu.trace_stop"() : () -> ()
    %cst_24 = arith.constant dense<0xFF800000> : vector<2x8xf32>
    %30 = vector.multi_reduction <maximumf>, %29, %cst_24 [2] : vector<2x8x8xf32> to vector<2x8xf32>
    %31 = vector.shape_cast %30 : vector<2x8xf32> to vector<2x8x1xf32>
    %32 = vector.broadcast %31 : vector<2x8x1xf32> to vector<2x8x8xf32>
    %33 = arith.subf %29, %32 : vector<2x8x8xf32>
    %34 = math.exp %33 : vector<2x8x8xf32>
    %cst_25 = arith.constant dense<0.000000e+00> : vector<2x8xf32>
    %35 = vector.multi_reduction <add>, %34, %cst_25 [2] : vector<2x8x8xf32> to vector<2x8xf32>
    %36 = vector.shape_cast %35 : vector<2x8xf32> to vector<2x8x1xf32>
    %37 = tpu.reciprocal %36 {approx = true} : vector<2x8x1xf32> -> vector<2x8x1xf32>
    %38 = vector.broadcast %37 : vector<2x8x1xf32> to vector<2x8x8xf32>
    %39 = arith.mulf %34, %38 : vector<2x8x8xf32>
    "tpu.trace_start"() <{level = 10 : i32, message = "bqk,bkd->bqd"}> : () -> ()
    %cst_26 = arith.constant dense<0.000000e+00> : vector<2x8x8xf32>
    %40 = tpu.matmul %39, %28, %cst_26 {dimension_numbers = #tpu.dot_dimension_numbers<[2], [1], [1], [2], [0, 0, 0, 1, 1, 2], [0], [0]>} : vector<2x8x8xf32>, vector<2x8x8xf32>, vector<2x8x8xf32> -> vector<2x8x8xf32>
    "tpu.trace_stop"() : () -> ()
    %41 = vector.extract_strided_slice %23 {offsets = [0, 0, 8], sizes = [2, 8, 8], strides = [1, 1, 1]} : vector<2x8x32xf32> to vector<2x8x8xf32>
    %42 = vector.extract_strided_slice %24 {offsets = [0, 0, 8], sizes = [2, 8, 8], strides = [1, 1, 1]} : vector<2x8x32xf32> to vector<2x8x8xf32>
    %43 = vector.extract_strided_slice %25 {offsets = [0, 0, 8], sizes = [2, 8, 8], strides = [1, 1, 1]} : vector<2x8x32xf32> to vector<2x8x8xf32>
    "tpu.trace_start"() <{level = 10 : i32, message = "bqd,bkd->bqk"}> : () -> ()
    %cst_27 = arith.constant dense<0.000000e+00> : vector<2x8x8xf32>
    %44 = tpu.matmul %41, %42, %cst_27 {dimension_numbers = #tpu.dot_dimension_numbers<[2], [2], [1], [1], [0, 0, 0, 1, 1, 1], [0], [0]>} : vector<2x8x8xf32>, vector<2x8x8xf32>, vector<2x8x8xf32> -> vector<2x8x8xf32>
    "tpu.trace_stop"() : () -> ()
    %cst_28 = arith.constant dense<0xFF800000> : vector<2x8xf32>
    %45 = vector.multi_reduction <maximumf>, %44, %cst_28 [2] : vector<2x8x8xf32> to vector<2x8xf32>
    %46 = vector.shape_cast %45 : vector<2x8xf32> to vector<2x8x1xf32>
    %47 = vector.broadcast %46 : vector<2x8x1xf32> to vector<2x8x8xf32>
    %48 = arith.subf %44, %47 : vector<2x8x8xf32>
    %49 = math.exp %48 : vector<2x8x8xf32>
    %cst_29 = arith.constant dense<0.000000e+00> : vector<2x8xf32>
    %50 = vector.multi_reduction <add>, %49, %cst_29 [2] : vector<2x8x8xf32> to vector<2x8xf32>
    %51 = vector.shape_cast %50 : vector<2x8xf32> to vector<2x8x1xf32>
    %52 = tpu.reciprocal %51 {approx = true} : vector<2x8x1xf32> -> vector<2x8x1xf32>
    %53 = vector.broadcast %52 : vector<2x8x1xf32> to vector<2x8x8xf32>
    %54 = arith.mulf %49, %53 : vector<2x8x8xf32>
    "tpu.trace_start"() <{level = 10 : i32, message = "bqk,bkd->bqd"}> : () -> ()
    %cst_30 = arith.constant dense<0.000000e+00> : vector<2x8x8xf32>
    %55 = tpu.matmul %54, %43, %cst_30 {dimension_numbers = #tpu.dot_dimension_numbers<[2], [1], [1], [2], [0, 0, 0, 1, 1, 2], [0], [0]>} : vector<2x8x8xf32>, vector<2x8x8xf32>, vector<2x8x8xf32> -> vector<2x8x8xf32>
    "tpu.trace_stop"() : () -> ()
    %56 = vector.extract_strided_slice %23 {offsets = [0, 0, 16], sizes = [2, 8, 8], strides = [1, 1, 1]} : vector<2x8x32xf32> to vector<2x8x8xf32>
    %57 = vector.extract_strided_slice %24 {offsets = [0, 0, 16], sizes = [2, 8, 8], strides = [1, 1, 1]} : vector<2x8x32xf32> to vector<2x8x8xf32>
    %58 = vector.extract_strided_slice %25 {offsets = [0, 0, 16], sizes = [2, 8, 8], strides = [1, 1, 1]} : vector<2x8x32xf32> to vector<2x8x8xf32>
    "tpu.trace_start"() <{level = 10 : i32, message = "bqd,bkd->bqk"}> : () -> ()
    %cst_31 = arith.constant dense<0.000000e+00> : vector<2x8x8xf32>
    %59 = tpu.matmul %56, %57, %cst_31 {dimension_numbers = #tpu.dot_dimension_numbers<[2], [2], [1], [1], [0, 0, 0, 1, 1, 1], [0], [0]>} : vector<2x8x8xf32>, vector<2x8x8xf32>, vector<2x8x8xf32> -> vector<2x8x8xf32>
    "tpu.trace_stop"() : () -> ()
    %cst_32 = arith.constant dense<0xFF800000> : vector<2x8xf32>
    %60 = vector.multi_reduction <maximumf>, %59, %cst_32 [2] : vector<2x8x8xf32> to vector<2x8xf32>
    %61 = vector.shape_cast %60 : vector<2x8xf32> to vector<2x8x1xf32>
    %62 = vector.broadcast %61 : vector<2x8x1xf32> to vector<2x8x8xf32>
    %63 = arith.subf %59, %62 : vector<2x8x8xf32>
    %64 = math.exp %63 : vector<2x8x8xf32>
    %cst_33 = arith.constant dense<0.000000e+00> : vector<2x8xf32>
    %65 = vector.multi_reduction <add>, %64, %cst_33 [2] : vector<2x8x8xf32> to vector<2x8xf32>
    %66 = vector.shape_cast %65 : vector<2x8xf32> to vector<2x8x1xf32>
    %67 = tpu.reciprocal %66 {approx = true} : vector<2x8x1xf32> -> vector<2x8x1xf32>
    %68 = vector.broadcast %67 : vector<2x8x1xf32> to vector<2x8x8xf32>
    %69 = arith.mulf %64, %68 : vector<2x8x8xf32>
    "tpu.trace_start"() <{level = 10 : i32, message = "bqk,bkd->bqd"}> : () -> ()
    %cst_34 = arith.constant dense<0.000000e+00> : vector<2x8x8xf32>
    %70 = tpu.matmul %69, %58, %cst_34 {dimension_numbers = #tpu.dot_dimension_numbers<[2], [1], [1], [2], [0, 0, 0, 1, 1, 2], [0], [0]>} : vector<2x8x8xf32>, vector<2x8x8xf32>, vector<2x8x8xf32> -> vector<2x8x8xf32>
    "tpu.trace_stop"() : () -> ()
    %71 = vector.extract_strided_slice %23 {offsets = [0, 0, 24], sizes = [2, 8, 8], strides = [1, 1, 1]} : vector<2x8x32xf32> to vector<2x8x8xf32>
    %72 = vector.extract_strided_slice %24 {offsets = [0, 0, 24], sizes = [2, 8, 8], strides = [1, 1, 1]} : vector<2x8x32xf32> to vector<2x8x8xf32>
    %73 = vector.extract_strided_slice %25 {offsets = [0, 0, 24], sizes = [2, 8, 8], strides = [1, 1, 1]} : vector<2x8x32xf32> to vector<2x8x8xf32>
    "tpu.trace_start"() <{level = 10 : i32, message = "bqd,bkd->bqk"}> : () -> ()
    %cst_35 = arith.constant dense<0.000000e+00> : vector<2x8x8xf32>
    %74 = tpu.matmul %71, %72, %cst_35 {dimension_numbers = #tpu.dot_dimension_numbers<[2], [2], [1], [1], [0, 0, 0, 1, 1, 1], [0], [0]>} : vector<2x8x8xf32>, vector<2x8x8xf32>, vector<2x8x8xf32> -> vector<2x8x8xf32>
    "tpu.trace_stop"() : () -> ()
    %cst_36 = arith.constant dense<0xFF800000> : vector<2x8xf32>
    %75 = vector.multi_reduction <maximumf>, %74, %cst_36 [2] : vector<2x8x8xf32> to vector<2x8xf32>
    %76 = vector.shape_cast %75 : vector<2x8xf32> to vector<2x8x1xf32>
    %77 = vector.broadcast %76 : vector<2x8x1xf32> to vector<2x8x8xf32>
    %78 = arith.subf %74, %77 : vector<2x8x8xf32>
    %79 = math.exp %78 : vector<2x8x8xf32>
    %cst_37 = arith.constant dense<0.000000e+00> : vector<2x8xf32>
    %80 = vector.multi_reduction <add>, %79, %cst_37 [2] : vector<2x8x8xf32> to vector<2x8xf32>
    %81 = vector.shape_cast %80 : vector<2x8xf32> to vector<2x8x1xf32>
    %82 = tpu.reciprocal %81 {approx = true} : vector<2x8x1xf32> -> vector<2x8x1xf32>
    %83 = vector.broadcast %82 : vector<2x8x1xf32> to vector<2x8x8xf32>
    %84 = arith.mulf %79, %83 : vector<2x8x8xf32>
    "tpu.trace_start"() <{level = 10 : i32, message = "bqk,bkd->bqd"}> : () -> ()
    %cst_38 = arith.constant dense<0.000000e+00> : vector<2x8x8xf32>
    %85 = tpu.matmul %84, %73, %cst_38 {dimension_numbers = #tpu.dot_dimension_numbers<[2], [1], [1], [2], [0, 0, 0, 1, 1, 2], [0], [0]>} : vector<2x8x8xf32>, vector<2x8x8xf32>, vector<2x8x8xf32> -> vector<2x8x8xf32>
    "tpu.trace_stop"() : () -> ()
    %86 = tpu.concatenate %40, %55, %70, %85 in 2 : vector<2x8x8xf32>, vector<2x8x8xf32>, vector<2x8x8xf32>, vector<2x8x8xf32> -> vector<2x8x32xf32>
    %87 = vector.shape_cast %86 : vector<2x8x32xf32> to vector<16x32xf32>
    %c0_39 = arith.constant 0 : index
    %c0_40 = arith.constant 0 : index
    %88 = vector.load %arg10[%c0_39, %c0_40] : memref<32x32xf32, #tpu.memory_space<vmem>>, vector<32x32xf32>
    %cst_41 = arith.constant dense<0.000000e+00> : vector<16x32xf32>
    %89 = tpu.matmul %87, %88, %cst_41 {dimension_numbers = #tpu.dot_dimension_numbers<[1], [0], [0], [1], [0, 0, 1, 1], [], []>} : vector<16x32xf32>, vector<32x32xf32>, vector<16x32xf32> -> vector<16x32xf32>
    %c0_42 = arith.constant 0 : index
    %c0_43 = arith.constant 0 : index
    %90 = vector.load %arg11[%c0_42, %c0_43] : memref<1x32xf32, #tpu.memory_space<vmem>>, vector<1x32xf32>
    %91 = vector.broadcast %90 : vector<1x32xf32> to vector<16x32xf32>
    %92 = arith.addf %89, %91 : vector<16x32xf32>
    %93 = vector.shape_cast %92 : vector<16x32xf32> to vector<2x8x32xf32>
    %c0_44 = arith.constant 0 : index
    %c0_45 = arith.constant 0 : index
    %c0_46 = arith.constant 0 : index
    %94 = vector.load %arg12[%c0_44, %c0_45, %c0_46] : memref<2x8x32xf32, #tpu.memory_space<vmem>>, vector<2x8x32xf32>
    tpu.vector_store %arg12[%c0_44, %c0_45, %c0_46], %93 {strides = array<i32>} : memref<2x8x32xf32, #tpu.memory_space<vmem>>, vector<2x8x32xf32>,
    return
  }
  func.func @transform_0(%arg0: i32) -> (i32, i32, i32) {
    %c0_i32 = arith.constant 0 : i32
    %c0_i32_0 = arith.constant 0 : i32
    %c0_i32_1 = arith.constant 0 : i32
    return %arg0, %c0_i32, %c0_i32_0 : i32, i32, i32
  }
  func.func @transform_1(%arg0: i32) -> (i32, i32, i32) {
    %c0_i32 = arith.constant 0 : i32
    %c0_i32_0 = arith.constant 0 : i32
    %c0_i32_1 = arith.constant 0 : i32
    return %arg0, %c0_i32, %c0_i32_0 : i32, i32, i32
  }
  func.func @transform_2(%arg0: i32) -> (i32, i32, i32) {
    %c0_i32 = arith.constant 0 : i32
    %c0_i32_0 = arith.constant 0 : i32
    %c0_i32_1 = arith.constant 0 : i32
    return %arg0, %c0_i32, %c0_i32_0 : i32, i32, i32
  }
  func.func @transform_3(%arg0: i32) -> (i32, i32) {
    %c0_i32 = arith.constant 0 : i32
    %c0_i32_0 = arith.constant 0 : i32
    %c0_i32_1 = arith.constant 0 : i32
    return %c0_i32, %c0_i32_0 : i32, i32
  }
  func.func @transform_4(%arg0: i32) -> (i32, i32) {
    %c0_i32 = arith.constant 0 : i32
    %c0_i32_0 = arith.constant 0 : i32
    %c0_i32_1 = arith.constant 0 : i32
    return %c0_i32, %c0_i32_0 : i32, i32
  }
  func.func @transform_5(%arg0: i32) -> (i32, i32) {
    %c0_i32 = arith.constant 0 : i32
    %c0_i32_0 = arith.constant 0 : i32
    %c0_i32_1 = arith.constant 0 : i32
    return %c0_i32, %c0_i32_0 : i32, i32
  }
  func.func @transform_6(%arg0: i32) -> (i32, i32) {
    %c0_i32 = arith.constant 0 : i32
    %c0_i32_0 = arith.constant 0 : i32
    %c0_i32_1 = arith.constant 0 : i32
    return %c0_i32, %c0_i32_0 : i32, i32
  }
  func.func @transform_7(%arg0: i32) -> (i32, i32) {
    %c0_i32 = arith.constant 0 : i32
    %c0_i32_0 = arith.constant 0 : i32
    %c0_i32_1 = arith.constant 0 : i32
    return %c0_i32, %c0_i32_0 : i32, i32
  }
  func.func @transform_8(%arg0: i32) -> (i32, i32) {
    %c0_i32 = arith.constant 0 : i32
    %c0_i32_0 = arith.constant 0 : i32
    %c0_i32_1 = arith.constant 0 : i32
    return %c0_i32, %c0_i32_0 : i32, i32
  }
  func.func @transform_9(%arg0: i32) -> (i32, i32) {
    %c0_i32 = arith.constant 0 : i32
    %c0_i32_0 = arith.constant 0 : i32
    %c0_i32_1 = arith.constant 0 : i32
    return %c0_i32, %c0_i32_0 : i32, i32
  }
  func.func @transform_10(%arg0: i32) -> (i32, i32) {
    %c0_i32 = arith.constant 0 : i32
    %c0_i32_0 = arith.constant 0 : i32
    %c0_i32_1 = arith.constant 0 : i32
    return %c0_i32, %c0_i32_0 : i32, i32
  }
  func.func @transform_11(%arg0: i32) -> (i32, i32, i32) {
    %c0_i32 = arith.constant 0 : i32
    %c0_i32_0 = arith.constant 0 : i32
    %c0_i32_1 = arith.constant 0 : i32
    return %arg0, %c0_i32, %c0_i32_0 : i32, i32, i32
  }
}

module attributes {stable_mosaic.version = 11 : i64} {
  func.func @_mha_kernel(%arg0: i32, %arg1: memref<2x8x32xf32, #tpu.memory_space<vmem>>, %arg2: memref<2x8x32xf32, #tpu.memory_space<vmem>>, %arg3: memref<2x8x32xf32, #tpu.memory_space<vmem>>, %arg4: memref<32x32xf32, #tpu.memory_space<vmem>>, %arg5: memref<1x32xf32, #tpu.memory_space<vmem>>, %arg6: memref<32x32xf32, #tpu.memory_space<vmem>>, %arg7: memref<1x32xf32, #tpu.memory_space<vmem>>, %arg8: memref<32x32xf32, #tpu.memory_space<vmem>>, %arg9: memref<1x32xf32, #tpu.memory_space<vmem>>, %arg10: memref<32x32xf32, #tpu.memory_space<vmem>>, %arg11: memref<1x32xf32, #tpu.memory_space<vmem>>, %arg12: memref<2x8x32xf32, #tpu.memory_space<vmem>>) attributes {dimension_semantics = [#tpu.dimension_semantics<parallel>], iteration_bounds = array<i64: 1>, scalar_prefetch = 0 : i64, scratch_operands = 0 : i64, tpu.core_type = #tpu.core_type<tc>, window_params = [{transform_indices = @transform_0, window_bounds = array<i64: 2, 8, 32>}, {transform_indices = @transform_1, window_bounds = array<i64: 2, 8, 32>}, {transform_indices = @transform_2, window_bounds = array<i64: 2, 8, 32>}, {pipeline_mode = #tpu.pipeline_mode<synchronous>, transform_indices = @transform_3, window_bounds = array<i64: 32, 32>}, {pipeline_mode = #tpu.pipeline_mode<synchronous>, transform_indices = @transform_4, window_bounds = array<i64: 1, 32>}, {pipeline_mode = #tpu.pipeline_mode<synchronous>, transform_indices = @transform_5, window_bounds = array<i64: 32, 32>}, {pipeline_mode = #tpu.pipeline_mode<synchronous>, transform_indices = @transform_6, window_bounds = array<i64: 1, 32>}, {pipeline_mode = #tpu.pipeline_mode<synchronous>, transform_indices = @transform_7, window_bounds = array<i64: 32, 32>}, {pipeline_mode = #tpu.pipeline_mode<synchronous>, transform_indices = @transform_8, window_bounds = array<i64: 1, 32>}, {pipeline_mode = #tpu.pipeline_mode<synchronous>, transform_indices = @transform_9, window_bounds = array<i64: 32, 32>}, {pipeline_mode = #tpu.pipeline_mode<synchronous>, transform_indices = @transform_10, window_bounds = array<i64: 1, 32>}, {transform_indices = @transform_11, window_bounds = array<i64: 2, 8, 32>}]} {
    %c0 = arith.constant 0 : index
    %c0_0 = arith.constant 0 : index
    %c0_1 = arith.constant 0 : index
    %0 = vector.load %arg1[%c0, %c0_0, %c0_1] : memref<2x8x32xf32, #tpu.memory_space<vmem>>, vector<2x8x32xf32>
    %1 = vector.shape_cast %0 : vector<2x8x32xf32> to vector<16x32xf32>
    %c0_2 = arith.constant 0 : index
    %c0_3 = arith.constant 0 : index
    %c0_4 = arith.constant 0 : index
    %2 = vector.load %arg2[%c0_2, %c0_3, %c0_4] : memref<2x8x32xf32, #tpu.memory_space<vmem>>, vector<2x8x32xf32>
    %3 = vector.shape_cast %2 : vector<2x8x32xf32> to vector<16x32xf32>
    %c0_5 = arith.constant 0 : index
    %c0_6 = arith.constant 0 : index
    %c0_7 = arith.constant 0 : index
    %4 = vector.load %arg3[%c0_5, %c0_6, %c0_7] : memref<2x8x32xf32, #tpu.memory_space<vmem>>, vector<2x8x32xf32>
    %5 = vector.shape_cast %4 : vector<2x8x32xf32> to vector<16x32xf32>
    %c0_8 = arith.constant 0 : index
    %c0_9 = arith.constant 0 : index
    %6 = vector.load %arg4[%c0_8, %c0_9] : memref<32x32xf32, #tpu.memory_space<vmem>>, vector<32x32xf32>
    %cst = arith.constant dense<0.000000e+00> : vector<16x32xf32>
    %7 = tpu.matmul %1, %6, %cst {dimension_numbers = #tpu.dot_dimension_numbers<[1], [0], [0], [1], [0, 0, 1, 1], [], []>} : vector<16x32xf32>, vector<32x32xf32>, vector<16x32xf32> -> vector<16x32xf32>
    %c0_10 = arith.constant 0 : index
    %c0_11 = arith.constant 0 : index
    %8 = vector.load %arg5[%c0_10, %c0_11] : memref<1x32xf32, #tpu.memory_space<vmem>>, vector<1x32xf32>
    %9 = vector.broadcast %8 : vector<1x32xf32> to vector<16x32xf32>
    %10 = arith.addf %7, %9 : vector<16x32xf32>
    %c0_12 = arith.constant 0 : index
    %c0_13 = arith.constant 0 : index
    %11 = vector.load %arg6[%c0_12, %c0_13] : memref<32x32xf32, #tpu.memory_space<vmem>>, vector<32x32xf32>
    %cst_14 = arith.constant dense<0.000000e+00> : vector<16x32xf32>
    %12 = tpu.matmul %3, %11, %cst_14 {dimension_numbers = #tpu.dot_dimension_numbers<[1], [0], [0], [1], [0, 0, 1, 1], [], []>} : vector<16x32xf32>, vector<32x32xf32>, vector<16x32xf32> -> vector<16x32xf32>
    %c0_15 = arith.constant 0 : index
    %c0_16 = arith.constant 0 : index
    %13 = vector.load %arg7[%c0_15, %c0_16] : memref<1x32xf32, #tpu.memory_space<vmem>>, vector<1x32xf32>
    %14 = vector.broadcast %13 : vector<1x32xf32> to vector<16x32xf32>
    %15 = arith.addf %12, %14 : vector<16x32xf32>
    %c0_17 = arith.constant 0 : index
    %c0_18 = arith.constant 0 : index
    %16 = vector.load %arg8[%c0_17, %c0_18] : memref<32x32xf32, #tpu.memory_space<vmem>>, vector<32x32xf32>
    %cst_19 = arith.constant dense<0.000000e+00> : vector<16x32xf32>
    %17 = tpu.matmul %5, %16, %cst_19 {dimension_numbers = #tpu.dot_dimension_numbers<[1], [0], [0], [1], [0, 0, 1, 1], [], []>} : vector<16x32xf32>, vector<32x32xf32>, vector<16x32xf32> -> vector<16x32xf32>
    %c0_20 = arith.constant 0 : index
    %c0_21 = arith.constant 0 : index
    %18 = vector.load %arg9[%c0_20, %c0_21] : memref<1x32xf32, #tpu.memory_space<vmem>>, vector<1x32xf32>
    %19 = vector.broadcast %18 : vector<1x32xf32> to vector<16x32xf32>
    %20 = arith.addf %17, %19 : vector<16x32xf32>
    %cst_22 = arith.constant 0.353553385 : f32
    %21 = vector.broadcast %cst_22 : f32 to vector<16x32xf32>
    %22 = arith.mulf %10, %21 : vector<16x32xf32>
    %23 = vector.shape_cast %22 : vector<16x32xf32> to vector<2x8x32xf32>
    %24 = vector.shape_cast %15 : vector<16x32xf32> to vector<2x8x32xf32>
    %25 = vector.shape_cast %20 : vector<16x32xf32> to vector<2x8x32xf32>
    %26 = vector.extract_strided_slice %23 {offsets = [0, 0, 0], sizes = [2, 8, 8], strides = [1, 1, 1]} : vector<2x8x32xf32> to vector<2x8x8xf32>
    %27 = vector.extract_strided_slice %24 {offsets = [0, 0, 0], sizes = [2, 8, 8], strides = [1, 1, 1]} : vector<2x8x32xf32> to vector<2x8x8xf32>
    %28 = vector.extract_strided_slice %25 {offsets = [0, 0, 0], sizes = [2, 8, 8], strides = [1, 1, 1]} : vector<2x8x32xf32> to vector<2x8x8xf32>
    "tpu.trace_start"() <{level = 10 : i32, message = "bqd,bkd->bqk"}> : () -> ()
    %cst_23 = arith.constant dense<0.000000e+00> : vector<2x8x8xf32>
    %29 = tpu.matmul %26, %27, %cst_23 {dimension_numbers = #tpu.dot_dimension_numbers<[2], [2], [1], [1], [0, 0, 0, 1, 1, 1], [0], [0]>} : vector<2x8x8xf32>, vector<2x8x8xf32>, vector<2x8x8xf32> -> vector<2x8x8xf32>
    "tpu.trace_stop"() : () -> ()
    %cst_24 = arith.constant dense<0xFF800000> : vector<2x8xf32>
    %30 = vector.multi_reduction <maximumf>, %29, %cst_24 [2] : vector<2x8x8xf32> to vector<2x8xf32>
    %31 = vector.shape_cast %30 : vector<2x8xf32> to vector<2x8x1xf32>
    %32 = vector.broadcast %31 : vector<2x8x1xf32> to vector<2x8x8xf32>
    %33 = arith.subf %29, %32 : vector<2x8x8xf32>
    %34 = math.exp %33 : vector<2x8x8xf32>
    %cst_25 = arith.constant dense<0.000000e+00> : vector<2x8xf32>
    %35 = vector.multi_reduction <add>, %34, %cst_25 [2] : vector<2x8x8xf32> to vector<2x8xf32>
    %36 = vector.shape_cast %35 : vector<2x8xf32> to vector<2x8x1xf32>
    %37 = tpu.reciprocal %36 {approx = true} : vector<2x8x1xf32> -> vector<2x8x1xf32>
    %38 = vector.broadcast %37 : vector<2x8x1xf32> to vector<2x8x8xf32>
    %39 = arith.mulf %34, %38 : vector<2x8x8xf32>
    "tpu.trace_start"() <{level = 10 : i32, message = "bqk,bkd->bqd"}> : () -> ()
    %cst_26 = arith.constant dense<0.000000e+00> : vector<2x8x8xf32>
    %40 = tpu.matmul %39, %28, %cst_26 {dimension_numbers = #tpu.dot_dimension_numbers<[2], [1], [1], [2], [0, 0, 0, 1, 1, 2], [0], [0]>} : vector<2x8x8xf32>, vector<2x8x8xf32>, vector<2x8x8xf32> -> vector<2x8x8xf32>
    "tpu.trace_stop"() : () -> ()
    %41 = vector.extract_strided_slice %23 {offsets = [0, 0, 8], sizes = [2, 8, 8], strides = [1, 1, 1]} : vector<2x8x32xf32> to vector<2x8x8xf32>
    %42 = vector.extract_strided_slice %24 {offsets = [0, 0, 8], sizes = [2, 8, 8], strides = [1, 1, 1]} : vector<2x8x32xf32> to vector<2x8x8xf32>
    %43 = vector.extract_strided_slice %25 {offsets = [0, 0, 8], sizes = [2, 8, 8], strides = [1, 1, 1]} : vector<2x8x32xf32> to vector<2x8x8xf32>
    "tpu.trace_start"() <{level = 10 : i32, message = "bqd,bkd->bqk"}> : () -> ()
    %cst_27 = arith.constant dense<0.000000e+00> : vector<2x8x8xf32>
    %44 = tpu.matmul %41, %42, %cst_27 {dimension_numbers = #tpu.dot_dimension_numbers<[2], [2], [1], [1], [0, 0, 0, 1, 1, 1], [0], [0]>} : vector<2x8x8xf32>, vector<2x8x8xf32>, vector<2x8x8xf32> -> vector<2x8x8xf32>
    "tpu.trace_stop"() : () -> ()
    %cst_28 = arith.constant dense<0xFF800000> : vector<2x8xf32>
    %45 = vector.multi_reduction <maximumf>, %44, %cst_28 [2] : vector<2x8x8xf32> to vector<2x8xf32>
    %46 = vector.shape_cast %45 : vector<2x8xf32> to vector<2x8x1xf32>
    %47 = vector.broadcast %46 : vector<2x8x1xf32> to vector<2x8x8xf32>
    %48 = arith.subf %44, %47 : vector<2x8x8xf32>
    %49 = math.exp %48 : vector<2x8x8xf32>
    %cst_29 = arith.constant dense<0.000000e+00> : vector<2x8xf32>
    %50 = vector.multi_reduction <add>, %49, %cst_29 [2] : vector<2x8x8xf32> to vector<2x8xf32>
    %51 = vector.shape_cast %50 : vector<2x8xf32> to vector<2x8x1xf32>
    %52 = tpu.reciprocal %51 {approx = true} : vector<2x8x1xf32> -> vector<2x8x1xf32>
    %53 = vector.broadcast %52 : vector<2x8x1xf32> to vector<2x8x8xf32>
    %54 = arith.mulf %49, %53 : vector<2x8x8xf32>
    "tpu.trace_start"() <{level = 10 : i32, message = "bqk,bkd->bqd"}> : () -> ()
    %cst_30 = arith.constant dense<0.000000e+00> : vector<2x8x8xf32>
    %55 = tpu.matmul %54, %43, %cst_30 {dimension_numbers = #tpu.dot_dimension_numbers<[2], [1], [1], [2], [0, 0, 0, 1, 1, 2], [0], [0]>} : vector<2x8x8xf32>, vector<2x8x8xf32>, vector<2x8x8xf32> -> vector<2x8x8xf32>
    "tpu.trace_stop"() : () -> ()
    %56 = vector.extract_strided_slice %23 {offsets = [0, 0, 16], sizes = [2, 8, 8], strides = [1, 1, 1]} : vector<2x8x32xf32> to vector<2x8x8xf32>
    %57 = vector.extract_strided_slice %24 {offsets = [0, 0, 16], sizes = [2, 8, 8], strides = [1, 1, 1]} : vector<2x8x32xf32> to vector<2x8x8xf32>
    %58 = vector.extract_strided_slice %25 {offsets = [0, 0, 16], sizes = [2, 8, 8], strides = [1, 1, 1]} : vector<2x8x32xf32> to vector<2x8x8xf32>
    "tpu.trace_start"() <{level = 10 : i32, message = "bqd,bkd->bqk"}> : () -> ()
    %cst_31 = arith.constant dense<0.000000e+00> : vector<2x8x8xf32>
    %59 = tpu.matmul %56, %57, %cst_31 {dimension_numbers = #tpu.dot_dimension_numbers<[2], [2], [1], [1], [0, 0, 0, 1, 1, 1], [0], [0]>} : vector<2x8x8xf32>, vector<2x8x8xf32>, vector<2x8x8xf32> -> vector<2x8x8xf32>
    "tpu.trace_stop"() : () -> ()
    %cst_32 = arith.constant dense<0xFF800000> : vector<2x8xf32>
    %60 = vector.multi_reduction <maximumf>, %59, %cst_32 [2] : vector<2x8x8xf32> to vector<2x8xf32>
    %61 = vector.shape_cast %60 : vector<2x8xf32> to vector<2x8x1xf32>
    %62 = vector.broadcast %61 : vector<2x8x1xf32> to vector<2x8x8xf32>
    %63 = arith.subf %59, %62 : vector<2x8x8xf32>
    %64 = math.exp %63 : vector<2x8x8xf32>
    %cst_33 = arith.constant dense<0.000000e+00> : vector<2x8xf32>
    %65 = vector.multi_reduction <add>, %64, %cst_33 [2] : vector<2x8x8xf32> to vector<2x8xf32>
    %66 = vector.shape_cast %65 : vector<2x8xf32> to vector<2x8x1xf32>
    %67 = tpu.reciprocal %66 {approx = true} : vector<2x8x1xf32> -> vector<2x8x1xf32>
    %68 = vector.broadcast %67 : vector<2x8x1xf32> to vector<2x8x8xf32>
    %69 = arith.mulf %64, %68 : vector<2x8x8xf32>
    "tpu.trace_start"() <{level = 10 : i32, message = "bqk,bkd->bqd"}> : () -> ()
    %cst_34 = arith.constant dense<0.000000e+00> : vector<2x8x8xf32>
    %70 = tpu.matmul %69, %58, %cst_34 {dimension_numbers = #tpu.dot_dimension_numbers<[2], [1], [1], [2], [0, 0, 0, 1, 1, 2], [0], [0]>} : vector<2x8x8xf32>, vector<2x8x8xf32>, vector<2x8x8xf32> -> vector<2x8x8xf32>
    "tpu.trace_stop"() : () -> ()
    %71 = vector.extract_strided_slice %23 {offsets = [0, 0, 24], sizes = [2, 8, 8], strides = [1, 1, 1]} : vector<2x8x32xf32> to vector<2x8x8xf32>
    %72 = vector.extract_strided_slice %24 {offsets = [0, 0, 24], sizes = [2, 8, 8], strides = [1, 1, 1]} : vector<2x8x32xf32> to vector<2x8x8xf32>
    %73 = vector.extract_strided_slice %25 {offsets = [0, 0, 24], sizes = [2, 8, 8], strides = [1, 1, 1]} : vector<2x8x32xf32> to vector<2x8x8xf32>
    "tpu.trace_start"() <{level = 10 : i32, message = "bqd,bkd->bqk"}> : () -> ()
    %cst_35 = arith.constant dense<0.000000e+00> : vector<2x8x8xf32>
    %74 = tpu.matmul %71, %72, %cst_35 {dimension_numbers = #tpu.dot_dimension_numbers<[2], [2], [1], [1], [0, 0, 0, 1, 1, 1], [0], [0]>} : vector<2x8x8xf32>, vector<2x8x8xf32>, vector<2x8x8xf32> -> vector<2x8x8xf32>
    "tpu.trace_stop"() : () -> ()
    %cst_36 = arith.constant dense<0xFF800000> : vector<2x8xf32>
    %75 = vector.multi_reduction <maximumf>, %74, %cst_36 [2] : vector<2x8x8xf32> to vector<2x8xf32>
    %76 = vector.shape_cast %75 : vector<2x8xf32> to vector<2x8x1xf32>
    %77 = vector.broadcast %76 : vector<2x8x1xf32> to vector<2x8x8xf32>
    %78 = arith.subf %74, %77 : vector<2x8x8xf32>
    %79 = math.exp %78 : vector<2x8x8xf32>
    %cst_37 = arith.constant dense<0.000000e+00> : vector<2x8xf32>
    %80 = vector.multi_reduction <add>, %79, %cst_37 [2] : vector<2x8x8xf32> to vector<2x8xf32>
    %81 = vector.shape_cast %80 : vector<2x8xf32> to vector<2x8x1xf32>
    %82 = tpu.reciprocal %81 {approx = true} : vector<2x8x1xf32> -> vector<2x8x1xf32>
    %83 = vector.broadcast %82 : vector<2x8x1xf32> to vector<2x8x8xf32>
    %84 = arith.mulf %79, %83 : vector<2x8x8xf32>
    "tpu.trace_start"() <{level = 10 : i32, message = "bqk,bkd->bqd"}> : () -> ()
    %cst_38 = arith.constant dense<0.000000e+00> : vector<2x8x8xf32>
    %85 = tpu.matmul %84, %73, %cst_38 {dimension_numbers = #tpu.dot_dimension_numbers<[2], [1], [1], [2], [0, 0, 0, 1, 1, 2], [0], [0]>} : vector<2x8x8xf32>, vector<2x8x8xf32>, vector<2x8x8xf32> -> vector<2x8x8xf32>
    "tpu.trace_stop"() : () -> ()
    %86 = tpu.concatenate %40, %55, %70, %85 in 2 : vector<2x8x8xf32>, vector<2x8x8xf32>, vector<2x8x8xf32>, vector<2x8x8xf32> -> vector<2x8x32xf32>
    %87 = vector.shape_cast %86 : vector<2x8x32xf32> to vector<16x32xf32>
    %c0_39 = arith.constant 0 : index
    %c0_40 = arith.constant 0 : index
    %88 = vector.load %arg10[%c0_39, %c0_40] : memref<32x32xf32, #tpu.memory_space<vmem>>, vector<32x32xf32>
    %cst_41 = arith.constant dense<0.000000e+00> : vector<16x32xf32>
    %89 = tpu.matmul %87, %88, %cst_41 {dimension_numbers = #tpu.dot_dimension_numbers<[1], [0], [0], [1], [0, 0, 1, 1], [], []>} : vector<16x32xf32>, vector<32x32xf32>, vector<16x32xf32> -> vector<16x32xf32>
    %c0_42 = arith.constant 0 : index
    %c0_43 = arith.constant 0 : index
    %90 = vector.load %arg11[%c0_42, %c0_43] : memref<1x32xf32, #tpu.memory_space<vmem>>, vector<1x32xf32>
    %91 = vector.broadcast %90 : vector<1x32xf32> to vector<16x32xf32>
    %92 = arith.addf %89, %91 : vector<16x32xf32>
    %93 = vector.shape_cast %92 : vector<16x32xf32> to vector<2x8x32xf32>
    %c0_44 = arith.constant 0 : index
    %c0_45 = arith.constant 0 : index
    %c0_46 = arith.constant 0 : index
    %94 = vector.load %arg12[%c0_44, %c0_45, %c0_46] : memref<2x8x32xf32, #tpu.memory_space<vmem>>, vector<2x8x32xf32>
    tpu.vector_store %arg12[%c0_44, %c0_45, %c0_46], %93 {strides = array<i32>} : memref<2x8x32xf32, #tpu.memory_space<vmem>>, vector<2x8x32xf32>,
    return
  }
  func.func @transform_0(%arg0: i32) -> (i32, i32, i32) {
    %c0_i32 = arith.constant 0 : i32
    %c0_i32_0 = arith.constant 0 : i32
    %c0_i32_1 = arith.constant 0 : i32
    return %arg0, %c0_i32, %c0_i32_0 : i32, i32, i32
  }
  func.func @transform_1(%arg0: i32) -> (i32, i32, i32) {
    %c0_i32 = arith.constant 0 : i32
    %c0_i32_0 = arith.constant 0 : i32
    %c0_i32_1 = arith.constant 0 : i32
    return %arg0, %c0_i32, %c0_i32_0 : i32, i32, i32
  }
  func.func @transform_2(%arg0: i32) -> (i32, i32, i32) {
    %c0_i32 = arith.constant 0 : i32
    %c0_i32_0 = arith.constant 0 : i32
    %c0_i32_1 = arith.constant 0 : i32
    return %arg0, %c0_i32, %c0_i32_0 : i32, i32, i32
  }
  func.func @transform_3(%arg0: i32) -> (i32, i32) {
    %c0_i32 = arith.constant 0 : i32
    %c0_i32_0 = arith.constant 0 : i32
    %c0_i32_1 = arith.constant 0 : i32
    return %c0_i32, %c0_i32_0 : i32, i32
  }
  func.func @transform_4(%arg0: i32) -> (i32, i32) {
    %c0_i32 = arith.constant 0 : i32
    %c0_i32_0 = arith.constant 0 : i32
    %c0_i32_1 = arith.constant 0 : i32
    return %c0_i32, %c0_i32_0 : i32, i32
  }
  func.func @transform_5(%arg0: i32) -> (i32, i32) {
    %c0_i32 = arith.constant 0 : i32
    %c0_i32_0 = arith.constant 0 : i32
    %c0_i32_1 = arith.constant 0 : i32
    return %c0_i32, %c0_i32_0 : i32, i32
  }
  func.func @transform_6(%arg0: i32) -> (i32, i32) {
    %c0_i32 = arith.constant 0 : i32
    %c0_i32_0 = arith.constant 0 : i32
    %c0_i32_1 = arith.constant 0 : i32
    return %c0_i32, %c0_i32_0 : i32, i32
  }
  func.func @transform_7(%arg0: i32) -> (i32, i32) {
    %c0_i32 = arith.constant 0 : i32
    %c0_i32_0 = arith.constant 0 : i32
    %c0_i32_1 = arith.constant 0 : i32
    return %c0_i32, %c0_i32_0 : i32, i32
  }
  func.func @transform_8(%arg0: i32) -> (i32, i32) {
    %c0_i32 = arith.constant 0 : i32
    %c0_i32_0 = arith.constant 0 : i32
    %c0_i32_1 = arith.constant 0 : i32
    return %c0_i32, %c0_i32_0 : i32, i32
  }
  func.func @transform_9(%arg0: i32) -> (i32, i32) {
    %c0_i32 = arith.constant 0 : i32
    %c0_i32_0 = arith.constant 0 : i32
    %c0_i32_1 = arith.constant 0 : i32
    return %c0_i32, %c0_i32_0 : i32, i32
  }
  func.func @transform_10(%arg0: i32) -> (i32, i32) {
    %c0_i32 = arith.constant 0 : i32
    %c0_i32_0 = arith.constant 0 : i32
    %c0_i32_1 = arith.constant 0 : i32
    return %c0_i32, %c0_i32_0 : i32, i32
  }
  func.func @transform_11(%arg0: i32) -> (i32, i32, i32) {
    %c0_i32 = arith.constant 0 : i32
    %c0_i32_0 = arith.constant 0 : i32
    %c0_i32_1 = arith.constant 0 : i32
    return %arg0, %c0_i32, %c0_i32_0 : i32, i32, i32
  }
}

</mosaic_0001>

<bundles_post_ra>
// kernel: tpu_custom_call.1
= control target key start
LH: loop header
LB: loop body
LE: loop exit
PB: predicated region body
PF: predicated region fallthrough
CT: control target
= control target key end

     0   :  { %16 = vsyncpa [#allocation3], 0  ;;  %s1386_s0 = inlined_call_operand.hbm [shape: f32[2,8,32], index: 0, kind: input, shape index: {}]   ;;  %s1387_s1 = inlined_call_operand.hbm [shape: f32[2,8,32], index: 1, kind: input, shape index: {}]   ;;  %s1388_s2 = inlined_call_operand.hbm [shape: f32[2,8,32], index: 2, kind: input, shape index: {}]   ;;  %s1389_s3 = inlined_call_operand.hbm [shape: f32[32,32], index: 3, kind: input, shape index: {}]   ;;  %s1390_s4 = inlined_call_operand.vmem [shape: f32[1,32], index: 4, kind: input, shape index: {}]   ;;  %s1391_s5 = inlined_call_operand.hbm [shape: f32[32,32], index: 5, kind: input, shape index: {}]   ;;  %s1392_s6 = inlined_call_operand.vmem [shape: f32[1,32], index: 6, kind: input, shape index: {}]   ;;  %s1393_s7 = inlined_call_operand.hbm [shape: f32[32,32], index: 7, kind: input, shape index: {}]   ;;  %s1394_s8 = inlined_call_operand.vmem [shape: f32[1,32], index: 8, kind: input, shape index: {}]   ;;  %s1395_s9 = inlined_call_operand.hbm [shape: f32[32,32], index: 9, kind: input, shape index: {}]   ;;  %s1396_s10 = inlined_call_operand.vmem [shape: f32[1,32], index: 10, kind: input, shape index: {}]   ;;  %s1397_s11 = inlined_call_operand.hbm [shape: f32[2,8,32], index: 11, kind: output, shape index: {}]  }
   0x1   :  { %17 = vsyncpa [#allocation6], 0 }
   0x2   :  { %18 = vsyncpa [#allocation9], 0 }
   0x3   :  { %19 = vsyncpa [#allocation12], 0 }
   0x4   :  { %20 = vsyncpa [#allocation4], 0  ;;  %s38_s19 = sshll.u32 %s1387_s1, 4  ;;  %s1168_s20 = smov [#allocation5]   ;;  %s39_s19 = int_to_ptr.hbm [resolvable:$true] %s38_s19 }
   0x5   :  { %s40_s21 = sshll.u32 %s1168_s20, 4  ;;  %s64_s24 = sshll.u32 %s1389_s3, 4  ;;  %s41_s21 = int_to_ptr.vmem [resolvable:$true] %s40_s21  ;;  %s65_s24 = int_to_ptr.hbm [resolvable:$true] %s64_s24 }
   0x6   :  { %s1169_s25 = smov 128   ;;  %s1170_s26 = smov 8  }
   0x7   :  { %46 = dma.hbm_to_vmem [thread:$0]  %s39_s19, 256, %s41_s21, [#allocation6], %s1169_s25, %s1169_s25, %s1170_s26  }
   0x8   :  { %s1171_s27 = smov [#allocation8]   ;;  %s94_s1 = sshll.u32 %s1393_s7, 4  ;;  %s95_s1 = int_to_ptr.hbm [resolvable:$true] %s94_s1 }
   0x9   :  { %s66_s28 = sshll.u32 %s1171_s27, 4  ;;  %s25_s13 = sshll.u32 %s1386_s0, 4  ;;  %s67_s28 = int_to_ptr.vmem [resolvable:$true] %s66_s28  ;;  %s26_s13 = int_to_ptr.hbm [resolvable:$true] %s25_s13 }
   0xa   :  { %72 = dma.hbm_to_vmem [thread:$0]  %s65_s24, 512, %s67_s28, [#allocation9], %s1169_s25, %s1169_s25, %s1170_s26  }
   0xb   :  { %s1172_s14 = smov [#allocation11]   ;;  %s1173_s16 = smov [#allocation2]  }
   0xc   :  { %s96_s15 = sshll.u32 %s1172_s14, 4  ;;  %s27_s7 = sshll.u32 %s1173_s16, 4  ;;  %s97_s15 = int_to_ptr.vmem [resolvable:$true] %s96_s15  ;;  %s28_s7 = int_to_ptr.vmem [resolvable:$true] %s27_s7 }
   0xd   :  { %102 = dma.hbm_to_vmem [thread:$0]  %s95_s1, 512, %s97_s15, [#allocation12], %s1169_s25, %s1169_s25, %s1170_s26  }
   0xe   :  { %s51_s19 = sshll.u32 %s1388_s2, 4  ;;  %s79_s21 = sshll.u32 %s1391_s5, 4  ;;  %s52_s19 = int_to_ptr.hbm [resolvable:$true] %s51_s19  ;;  %s80_s21 = int_to_ptr.hbm [resolvable:$true] %s79_s21 }
   0xf   :  { %33 = dma.hbm_to_vmem [thread:$0]  %s26_s13, 256, %s28_s7, [#allocation3], %s1169_s25, %s1169_s25, %s1170_s26  }
  0x10   :  { %s1174_s22 = smov [#allocation7]   ;;  %s1175_s24 = smov [#allocation10]  }
  0x11   :  { %s53_s23 = sshll.u32 %s1174_s22, 4  ;;  %s81_s2 = sshll.u32 %s1175_s24, 4  ;;  %s54_s23 = int_to_ptr.vmem [resolvable:$true] %s53_s23  ;;  %s82_s2 = int_to_ptr.vmem [resolvable:$true] %s81_s2 }
  0x12   :  { %59 = dma.hbm_to_vmem [thread:$0]  %s52_s19, 256, %s54_s23, [#allocation6], %s1169_s25, %s1169_s25, %s1170_s26  }
  0x13   :  { %s109_s29 = sshll.u32 %s1395_s9, 4  ;;  %s1176_s5 = smov [#allocation13]   ;;  %s110_s29 = int_to_ptr.hbm [resolvable:$true] %s109_s29 }
  0x14   :  { %87 = dma.hbm_to_vmem [thread:$0]  %s80_s21, 512, %s82_s2, [#allocation9], %s1169_s25, %s1169_s25, %s1170_s26  }
  0x15   :  { %s111_s30 = sshll.u32 %s1176_s5, 4  ;;  %s112_s30 = int_to_ptr.vmem [resolvable:$true] %s111_s30 }
  0x16   :  { %117 = dma.hbm_to_vmem [thread:$0]  %s110_s29, 512, %s112_s30, [#allocation12], %s1169_s25, %s1169_s25, %s1170_s26  }
  0x17   :  { %1158 = dma.done.wait [#allocation3], 256  }
  0x18   :  { %1159 = vsyncadd [#allocation3], 4294967040 }
  0x19   :  { %1160 = dma.done.wait [#allocation6], 512  }
  0x1a   :  { %1161 = vsyncadd [#allocation6], 4294966784 }
  0x1b   :  { %1162 = dma.done.wait [#allocation9], 1024  }
  0x1c   :  { %1163 = vsyncadd [#allocation9], 4294966272 }
  0x1d   :  { %1164 = dma.done.wait [#allocation12], 1024  }
  0x1e   :  { %1165 = vsyncadd [#allocation12], 4294966272  ;;  %v195_v0 = vld [vmem:[#allocation10 + $0x18] sm:$0xff]  ;;  %v194_v2 = vld [vmem:[#allocation10 + $0x10] sm:$0xff]  ;;  %vm162_vm0 = vcmask 261120   ;;  %vm268_vm1 = vcmask 64512  }
  0x1f   :  { %v157_v1 = vld [vmem:[#allocation8 + $0x18] sm:$0xff]  ;;  %218 = vmatpush.msra.mxu1 %v195_v0  ;;  %v156_v3 = vld [vmem:[#allocation8 + $0x10] sm:$0xff]  ;;  %906 = vmatpush.msra.mxu2 %v195_v0  ;;  %v193_v4 = vld [vmem:[#allocation10 + $0x8] sm:$0xff]  ;;  %s1177_s13 = smov 112   ;;  %s1178_s14 = smov 120   ;;  %vm807_vm2 = vcmask 130048  }
  0x20   :  { %181 = vmatpush.msra.mxu0 %v157_v1  ;;  %v155_v5 = vld [vmem:[#allocation8 + $0x8] sm:$0xff]  ;;  %v192_v6 = vld [vmem:[#allocation10] sm:$0xff]  ;;  %v148_v9 = vld [vmem:[#allocation2] sm:$0xff]  ;;  %s1181_s16 = smov 24   ;;  %vm810_vm3 = vcmask 195584   ;;  %s1182_s18 = smov [#allocation14]  }
  0x21   :  { %219 = vmatpush.msra.mxu1 %v194_v2  ;;  %v154_v7 = vld [vmem:[#allocation8] sm:$0xff]  ;;  %907 = vmatpush.msra.mxu2 %v194_v2  ;;  %v151_v10 = vld [vmem:[#allocation5 + $0x8] sm:$0xff]  ;;  %v149_v11 = vld [vmem:[#allocation2 + $0x8] sm:$0xff]  ;;  %s856_s19 = sshll.u32 %s1182_s18, 4  ;;  %s858_s21 = sshll.u32 %s1397_s11, 4  ;;  %s857_s19 = int_to_ptr.vmem [resolvable:$true] %s856_s19  ;;  %s859_s21 = int_to_ptr.hbm [resolvable:$true] %s858_s21 }
  0x22   :  { %182 = vmatpush.msra.mxu0 %v156_v3  ;;  %v150_v8 = vld [vmem:[#allocation5] sm:$0xff]  ;;  %v930_v12 = vld [vmem:[%s1392_s6] ss:$0 sm:$0xff]  ;;  %v232_v24 = vld [vmem:[#allocation11 + $0x18] sm:$0xff] }
  0x23   :  { %220 = vmatpush.msra.mxu1 %v193_v4  ;;  %908 = vmatpush.msra.mxu2 %v193_v4  ;;  %v931_v13 = vld [vmem:[%s1390_s4] ss:$0 sm:$0xff]  ;;  %s1179_s4 = smov 104   ;;  %v230_v26 = vld [vmem:[#allocation11 + $0x8] sm:$0xff]  ;;  %v229_v27 = vld [vmem:[#allocation11] sm:$0xff] }
  0x24   :  { %183 = vmatpush.msra.mxu0 %v155_v5  ;;  %v231_v25 = vld [vmem:[#allocation11 + $0x10] sm:$0xff]  ;;  %v153_v29 = vld [vmem:[#allocation7 + $0x8] sm:$0xff] }
  0x25   :  { %221 = vmatpush.msra.mxu1 %v192_v6  ;;  %909 = vmatpush.msra.mxu2 %v192_v6  ;;  %v152_v28 = vld [vmem:[#allocation7] sm:$0xff] }
  0x26   :  { %184 = vmatpush.msra.mxu0 %v154_v7  ;;  %876 = vmatmul.msk.f32.vlgmr.msra.gmra.mxu1 %vm162_vm0, %v150_v8  ;;  %v932_v46 = vld [vmem:[%s1394_s8] ss:$0 sm:$0xff]  ;;  %s1180_s8 = smov 16  }
  0x27   :  { %874 = vmatmul.msk.f32.vlgmr.msra.gmra.mxu0 %vm162_vm0, %v148_v9  ;;  %877 = vmatmul.msk.f32.vlgmr.msra.gmra.mxu2 %vm162_vm0, %v151_v10 }
  0x28   :  { %255 = vmatpush.msrb.mxu2 %v232_v24 }
  0x2a   :  { %256 = vmatpush.msrb.mxu2 %v231_v25 }
  0x2c   :  { %257 = vmatpush.msrb.mxu2 %v230_v26 }
  0x2e   :  { %258 = vmatpush.msrb.mxu2 %v229_v27 }
  0x2f   :  { %875 = vmatmul.msk.f32.gmra.mxu0 %vm162_vm0, %v149_v11  ;;  %878 = vmatmul.msk.f32.vlgmr.msrb.gmra.mxu2 %vm162_vm0, %v152_v28 }
  0x37   :  { %879 = vmatmul.msk.f32.gmra.mxu2 %vm162_vm0, %v153_v29 }
  0xa3   :  { %v223_v14 = vpop.f32.mrf.mxu1 }
  0xa4   :  { %v186_v15 = vpop.f32.mrf.mxu0  ;;  %v224_v16 = vadd.f32 %v930_v12, %v223_v14 }
  0xa5   :  { %v187_v17 = vadd.f32 %v931_v13, %v186_v15 }
  0xa6   :  { %523 = vrot.lane.b32.xlu1 %v224_v16, %s1177_s13  ;;  %391 = vrot.lane.b32.xlu0 %v224_v16, %s1178_s14 }
  0xa7   :  { %v266_v18 = vmul.f32 0.35355338, %v187_v17  ;;  %880 = vmatpush.xpose.msk.msra.mxu3 %vm268_vm1, %v224_v16 }
  0xa9   :  { %521 = vrot.lane.b32.xlu2 %v266_v18, %s1177_s13 }
  0xaa   :  { %881 = vmatmul.msk.f32.vlgmr.msra.gmra.mxu3 %vm268_vm1, %v266_v18  ;;  %v226_v19 = vpop.f32.mrf.mxu2 }
  0xab   :  { %v227_v21 = vadd.f32 %v930_v12, %v226_v19 }
  0xac   :  { %v189_v20 = vpop.f32.mrf.mxu0 }
  0xad   :  { %v190_v22 = vadd.f32 %v931_v13, %v189_v20  ;;  %882 = vmatpush.xpose.msk.msrb.mxu3 %vm268_vm1, %v227_v21 }
  0xae   :  { %419 = vrot.lane.b32.xlu1 %v227_v21, %s1178_s14  ;;  %389 = vrot.lane.b32.xlu0 %v266_v18, %s1178_s14 }
  0xaf   :  { %v267_v23 = vmul.f32 0.35355338, %v190_v22 }
  0xb1   :  { %417 = vrot.lane.b32.xlu2 %v267_v23, %s1178_s14 }
  0xb2   :  { %883 = vmatmul.msk.f32.vlgmr.msrb.gmra.mxu3 %vm268_vm1, %v267_v23  ;;  %v260_v47 = vpop.f32.mrf.mxu2 }
  0xb3   :  { %v1330_v48 = vadd.f32 %v932_v46, %v260_v47 }
  0xb5   :  { %361 = vmatpush.msra.mxu3 %v1330_v48 }
  0xb6   :  { %653 = vrot.lane.b32.xlu1 %v224_v16, %s1179_s4  ;;  %551 = vrot.lane.b32.xlu0 %v227_v21, %s1177_s13 }
  0xb9   :  { %549 = vrot.lane.b32.xlu2 %v267_v23, %s1177_s13 }
  0xba   :  { %v263_v49 = vpop.f32.mrf.mxu2 }
  0xbb   :  { %v1333_v50 = vadd.f32 %v932_v46, %v263_v49 }
  0xbd   :  { %384 = vmatpush.msrb.mxu0 %v1333_v50 }
  0xbe   :  { %681 = vrot.lane.b32.xlu1 %v227_v21, %s1179_s4  ;;  %651 = vrot.lane.b32.xlu0 %v266_v18, %s1179_s4 }
  0xc1   :  { %679 = vrot.lane.b32.xlu2 %v267_v23, %s1179_s4 }
 0x103   :  { %v522_v30 = vpop.permute.xlu2 %521 }
 0x10b   :  { %v418_v33 = vpop.permute.xlu2 %417 }
 0x113   :  { %v550_v38 = vpop.permute.xlu2 %549 }
 0x118   :  { %v524_v31 = vpop.permute.xlu1 %523  ;;  %v392_v32 = vpop.permute.xlu0 %391 }
 0x119   :  { %886 = vmatpush.xpose.msk.msrb.mxu1 %vm268_vm1, %v392_v32 }
 0x11b   :  { %v680_v43 = vpop.permute.xlu2 %679 }
 0x11d   :  { %892 = vmatpush.xpose.msk.msra.mxu1 %vm268_vm1, %v524_v31 }
 0x120   :  { %v420_v34 = vpop.permute.xlu1 %419  ;;  %v390_v35 = vpop.permute.xlu0 %389 }
 0x121   :  { %888 = vmatpush.xpose.msk.msra.mxu2 %vm268_vm1, %v420_v34  ;;  %887 = vmatmul.msk.f32.vlgmr.msrb.gmra.mxu1 %vm268_vm1, %v390_v35 }
 0x124   :  { %889 = vmatmul.msk.f32.vlgmr.msra.gmra.mxu2 %vm268_vm1, %v418_v33 }
 0x128   :  { %v654_v36 = vpop.permute.xlu1 %653  ;;  %v552_v37 = vpop.permute.xlu0 %551 }
 0x129   :  { %898 = vmatpush.xpose.msk.msrb.mxu1 %vm268_vm1, %v654_v36  ;;  %894 = vmatpush.xpose.msk.msrb.mxu2 %vm268_vm1, %v552_v37 }
 0x12a   :  { %893 = vmatmul.msk.f32.vlgmr.msra.gmra.mxu1 %vm268_vm1, %v522_v30 }
 0x12c   :  { %895 = vmatmul.msk.f32.vlgmr.msrb.gmra.mxu2 %vm268_vm1, %v550_v38 }
 0x12d   :  { %v292_v39 = vpop.f32.mrf.mxu3 }
 0x12e   :  { %v321_v40 = vsel %vm268_vm1, %v292_v39, -inf }
 0x12f   :  { %322 = vmax.xlane.f32.xlu0 %v321_v40 }
 0x130   :  { %v682_v41 = vpop.permute.xlu1 %681  ;;  %v652_v42 = vpop.permute.xlu0 %651 }
 0x131   :  { %900 = vmatpush.xpose.msk.msra.mxu2 %vm268_vm1, %v682_v41 }
 0x132   :  { %899 = vmatmul.msk.f32.vlgmr.msrb.gmra.mxu1 %vm268_vm1, %v652_v42 }
 0x134   :  { %901 = vmatmul.msk.f32.vlgmr.msra.gmra.mxu2 %vm268_vm1, %v680_v43 }
 0x135   :  { %v318_v44 = vpop.f32.mrf.mxu3 }
 0x136   :  { %v324_v45 = vsel %vm268_vm1, %v318_v44, -inf }
 0x137   :  { %325 = vmax.xlane.f32.xlu2 %v324_v45 }
 0x19e   :  { %v414_v51 = vpop.f32.mrf.mxu1 }
 0x19f   :  { %v445_v52 = vsel %vm268_vm1, %v414_v51, -inf }
 0x1a0   :  { %446 = vmax.xlane.f32.xlu1 %v445_v52 }
 0x1a2   :  { %v323_v53 = vpop.xlane.xlu0 %322 }
 0x1a3   :  { %v327_v54 = vsub.f32 %v292_v39, %v323_v53  ;;  %v925_v39 = vpack.i.bf16 %v1333_v50, %v1330_v48 }
 0x1a5   :  { %v329_v59 = vmul.f32 1.442695, %v327_v54 }
 0x1a7   :  { %v546_v55 = vpop.f32.mrf.mxu1  ;;  %v442_v56 = vpop.f32.mrf.mxu2  ;;  %934 = vpow2.f32 %v329_v59 }
 0x1a8   :  { %v577_v57 = vsel %vm268_vm1, %v546_v55, -inf  ;;  %v448_v58 = vsel %vm268_vm1, %v442_v56, -inf }
 0x1a9   :  { %578 = vmax.xlane.f32.xlu2 %v577_v57  ;;  %449 = vmax.xlane.f32.xlu0 %v448_v58 }
 0x1aa   :  { %v326_v60 = vpop.xlane.xlu2 %325 }
 0x1ab   :  { %v328_v61 = vsub.f32 %v318_v44, %v326_v60 }
 0x1ad   :  { %v331_v62 = vmul.f32 1.442695, %v328_v61  ;;  %v935_v3 = vpop.eup %934 }
 0x1ae   :  { %v333_v6 = vsel %vm268_vm1, %v935_v3, 0.0 }
 0x1af   :  { %936 = vpow2.f32 %v331_v62  ;;  %v676_v63 = vpop.f32.mrf.mxu1  ;;  %v574_v0 = vpop.f32.mrf.mxu2 }
 0x1b0   :  { %v707_v1 = vsel %vm268_vm1, %v676_v63, -inf  ;;  %v580_v2 = vsel %vm268_vm1, %v574_v0, -inf }
 0x1b1   :  { %708 = vmax.xlane.f32.xlu1 %v707_v1  ;;  %581 = vmax.xlane.f32.xlu2 %v580_v2 }
 0x1b5   :  { %v937_v4 = vpop.eup %936 }
 0x1b6   :  { %v336_v5 = vsel %vm268_vm1, %v937_v4, 0.0 }
 0x1b7   :  { %337 = vadd.xlane.f32.xlu0 %v336_v5  ;;  %v704_v7 = vpop.f32.mrf.mxu2 }
 0x1b8   :  { %v710_v8 = vsel %vm268_vm1, %v704_v7, -inf }
 0x1b9   :  { %334 = vadd.xlane.f32.xlu1 %v333_v6 }
 0x1bf   :  { %711 = vmax.xlane.f32.xlu0 %v710_v8 }
 0x1d3   :  { %599 = vrot.lane.b32.xlu0 %v1330_v48, %s1177_s13 }
 0x213   :  { %v447_v9 = vpop.xlane.xlu1 %446 }
 0x214   :  { %v451_v10 = vsub.f32 %v414_v51, %v447_v9 }
 0x216   :  { %v453_v11 = vmul.f32 1.442695, %v451_v10 }
 0x218   :  { %938 = vpow2.f32 %v453_v11 }
 0x21c   :  { %v579_v12 = vpop.xlane.xlu2 %578  ;;  %v450_v13 = vpop.xlane.xlu0 %449 }
 0x21d   :  { %v583_v14 = vsub.f32 %v546_v55, %v579_v12  ;;  %v452_v15 = vsub.f32 %v442_v56, %v450_v13 }
 0x21e   :  { %v939_v16 = vpop.eup %938 }
 0x21f   :  { %v585_v17 = vmul.f32 1.442695, %v583_v14  ;;  %v455_v18 = vmul.f32 1.442695, %v452_v15  ;;  %v457_v19 = vsel %vm268_vm1, %v939_v16, 0.0  ;;  %v816_v15 = vld [vmem:[#allocation13 + $0x18] sm:$0xff] }
 0x220   :  { %458 = vadd.xlane.f32.xlu2 %v457_v19  ;;  %839 = vmatpush.msra.mxu1 %v816_v15 }
 0x221   :  { %940 = vpow2.f32 %v585_v17  ;;  %v814_v17 = vld [vmem:[#allocation13 + $0x8] sm:$0xff] }
 0x222   :  { %942 = vpow2.f32 %v455_v18  ;;  %v813_v18 = vld [vmem:[#allocation13] sm:$0xff] }
 0x224   :  { %v709_v20 = vpop.xlane.xlu1 %708  ;;  %v582_v22 = vpop.xlane.xlu2 %581 }
 0x225   :  { %v713_v21 = vsub.f32 %v676_v63, %v709_v20  ;;  %v584_v25 = vsub.f32 %v574_v0, %v582_v22 }
 0x227   :  { %v941_v23 = vpop.eup %940  ;;  %v715_v24 = vmul.f32 1.442695, %v713_v21  ;;  %v587_v30 = vmul.f32 1.442695, %v584_v25 }
 0x228   :  { %v943_v26 = vpop.eup %942  ;;  %v589_v27 = vsel %vm268_vm1, %v941_v23, 0.0 }
 0x229   :  { %944 = vpow2.f32 %v715_v24  ;;  %590 = vadd.xlane.f32.xlu1 %v589_v27  ;;  %v460_v28 = vsel %vm268_vm1, %v943_v26, 0.0 }
 0x22a   :  { %461 = vadd.xlane.f32.xlu0 %v460_v28  ;;  %v338_v29 = vpop.xlane.xlu0 %337 }
 0x22b   :  { %946 = vrcp.f32 %v338_v29 }
 0x22c   :  { %v335_v31 = vpop.xlane.xlu1 %334 }
 0x22d   :  { %948 = vrcp.f32 %v335_v31  ;;  %v933_v31 = vld [vmem:[%s1396_s10] ss:$0 sm:$0xff] }
 0x22e   :  { %950 = vpow2.f32 %v587_v30 }
 0x22f   :  { %v945_v32 = vpop.eup %944 }
 0x230   :  { %v719_v33 = vsel %vm268_vm1, %v945_v32, 0.0 }
 0x231   :  { %v947_v34 = vpop.eup %946  ;;  %720 = vadd.xlane.f32.xlu1 %v719_v33 }
 0x232   :  { %v342_v35 = vmul.f32 %v947_v34, %v937_v4  ;;  %v712_v41 = vpop.xlane.xlu0 %711 }
 0x233   :  { %v949_v36 = vpop.eup %948  ;;  %v714_v42 = vsub.f32 %v704_v7, %v712_v41 }
 0x234   :  { %v341_v37 = vmul.f32 %v949_v36, %v935_v3  ;;  %885 = vmatmul.msk.f32.vlgmr.msrb.gmra.mxu0 %vm268_vm1, %v342_v35  ;;  %v951_v38 = vpop.eup %950 }
 0x235   :  { %v592_v40 = vsel %vm268_vm1, %v951_v38, 0.0  ;;  %v717_v43 = vmul.f32 1.442695, %v714_v42 }
 0x236   :  { %884 = vmatmul.msk.f32.vlgmr.msra.gmra.mxu3 %vm268_vm1, %v341_v37 }
 0x237   :  { %952 = vpow2.f32 %v717_v43 }
 0x238   :  { %926 = vrot.lane.b32.xlu2 %v925_v39, %s1178_s14 }
 0x239   :  { %593 = vadd.xlane.f32.xlu1 %v592_v40 }
 0x23d   :  { %v953_v44 = vpop.eup %952 }
 0x23e   :  { %625 = vrot.lane.b32.xlu0 %v1333_v50, %s1177_s13  ;;  %v722_v45 = vsel %vm268_vm1, %v953_v44, 0.0 }
 0x245   :  { %v600_v47 = vpop.permute.xlu0 %599 }
 0x246   :  { %755 = vrot.lane.b32.xlu0 %v1333_v50, %s1179_s4 }
 0x252   :  { %729 = vrot.lane.b32.xlu1 %v1330_v48, %s1179_s4 }
 0x261   :  { %723 = vadd.xlane.f32.xlu2 %v722_v45 }
 0x293   :  { %v459_v46 = vpop.xlane.xlu2 %458 }
 0x294   :  { %954 = vrcp.f32 %v459_v46 }
 0x29a   :  { %v955_v49 = vpop.eup %954 }
 0x29b   :  { %v927_v52 = vpop.permute.xlu2 %926  ;;  %v465_v55 = vmul.f32 %v955_v49, %v939_v16  ;;  %v815_v16 = vld [vmem:[#allocation13 + $0x10] sm:$0xff] }
 0x29c   :  { %v591_v51 = vpop.xlane.xlu1 %590  ;;  %v929_v53 = vunpack.i.h.bf16 %v927_v52  ;;  %v928_v50 = vunpack.i.l.bf16 %v927_v52  ;;  %840 = vmatpush.msra.mxu1 %v815_v16 }
 0x29d   :  { %956 = vrcp.f32 %v591_v51  ;;  %v462_v54 = vpop.xlane.xlu0 %461 }
 0x29e   :  { %958 = vrcp.f32 %v462_v54  ;;  %489 = vmatpush.msrb.mxu3 %v928_v50  ;;  %516 = vmatpush.msra.mxu0 %v929_v53 }
 0x29f   :  { %890 = vmatmul.msk.f32.vlgmr.msrb.gmra.mxu3 %vm268_vm1, %v465_v55  ;;  %841 = vmatpush.msra.mxu1 %v814_v17 }
 0x2a0   :  { %620 = vmatpush.msra.mxu3 %v600_v47 }
 0x2a1   :  { %842 = vmatpush.msra.mxu1 %v813_v18 }
 0x2a3   :  { %v957_v48 = vpop.eup %956 }
 0x2a4   :  { %v959_v56 = vpop.eup %958  ;;  %v721_v57 = vpop.xlane.xlu1 %720  ;;  %v597_v59 = vmul.f32 %v957_v48, %v941_v23 }
 0x2a5   :  { %v466_v58 = vmul.f32 %v959_v56, %v943_v26 }
 0x2a7   :  { %891 = vmatmul.msk.f32.vlgmr.msra.gmra.mxu0 %vm268_vm1, %v466_v58  ;;  %896 = vmatmul.msk.f32.vlgmr.msra.gmra.mxu3 %vm268_vm1, %v597_v59 }
 0x2ac   :  { %v594_v60 = vpop.xlane.xlu1 %593 }
 0x2ad   :  { %960 = vrcp.f32 %v594_v60 }
 0x2ae   :  { %962 = vrcp.f32 %v721_v57 }
 0x2b0   :  { %v626_v61 = vpop.permute.xlu0 %625 }
 0x2b1   :  { %646 = vmatpush.msrb.mxu0 %v626_v61  ;;  %v386_v9 = vpop.f32.mrf.mxu0 }
 0x2b3   :  { %v961_v62 = vpop.eup %960 }
 0x2b4   :  { %v598_v63 = vmul.f32 %v961_v62, %v951_v38  ;;  %v963_v1 = vpop.eup %962 }
 0x2b5   :  { %v727_v2 = vmul.f32 %v963_v1, %v945_v32 }
 0x2b6   :  { %897 = vmatmul.msk.f32.vlgmr.msrb.gmra.mxu0 %vm268_vm1, %v598_v63 }
 0x2b8   :  { %v756_v0 = vpop.permute.xlu0 %755 }
 0x2b9   :  { %776 = vmatpush.msra.mxu0 %v756_v0  ;;  %v363_v7 = vpop.f32.mrf.mxu3 }
 0x2c4   :  { %v730_v3 = vpop.permute.xlu1 %729 }
 0x2c5   :  { %750 = vmatpush.msrb.mxu3 %v730_v3 }
 0x2c6   :  { %902 = vmatmul.msk.f32.vlgmr.msrb.gmra.mxu3 %vm268_vm1, %v727_v2 }
 0x2d4   :  { %v724_v4 = vpop.xlane.xlu2 %723 }
 0x2d5   :  { %964 = vrcp.f32 %v724_v4 }
 0x2db   :  { %v965_v5 = vpop.eup %964 }
 0x2dc   :  { %v728_v6 = vmul.f32 %v965_v5, %v953_v44 }
 0x2de   :  { %903 = vmatmul.msk.f32.vlgmr.msra.gmra.mxu0 %vm268_vm1, %v728_v6 }
 0x322   :  { %v491_v8 = vpop.f32.mrf.mxu3 }
 0x323   :  { %783 = vrot.lane.b32.xlu1 %v491_v8, %s1170_s26 }
 0x324   :  { %v518_v11 = vpop.f32.mrf.mxu0 }
 0x32a   :  { %v622_v10 = vpop.f32.mrf.mxu3 }
 0x32b   :  { %791 = vrot.lane.b32.xlu0 %v622_v10, %s1180_s8 }
 0x333   :  { %785 = vrot.lane.b32.xlu0 %v518_v11, %s1170_s26  ;;  %v648_v13 = vpop.f32.mrf.mxu0 }
 0x349   :  { %v752_v12 = vpop.f32.mrf.mxu3 }
 0x34a   :  { %799 = vrot.lane.b32.xlu1 %v752_v12, %s1181_s16 }
 0x352   :  { %793 = vrot.lane.b32.xlu1 %v648_v13, %s1180_s8 }
 0x35b   :  { %v778_v14 = vpop.f32.mrf.mxu0 }
 0x35c   :  { %801 = vrot.lane.b32.xlu0 %v778_v14, %s1181_s16 }
 0x395   :  { %v784_v19 = vpop.permute.xlu1 %783 }
 0x396   :  { %v805_v21 = vsel %vm268_vm1, %v363_v7, %v784_v19 }
 0x39d   :  { %v792_v20 = vpop.permute.xlu0 %791 }
 0x39e   :  { %v808_v22 = vsel %vm807_vm2, %v805_v21, %v792_v20 }
 0x3a5   :  { %v786_v25 = vpop.permute.xlu0 %785 }
 0x3a6   :  { %v806_v27 = vsel %vm268_vm1, %v386_v9, %v786_v25 }
 0x3bc   :  { %v800_v23 = vpop.permute.xlu1 %799 }
 0x3bd   :  { %v811_v24 = vsel %vm810_vm3, %v808_v22, %v800_v23 }
 0x3be   :  { %904 = vmatmul.msk.f32.vlgmr.msra.gmra.mxu1 %vm162_vm0, %v811_v24 }
 0x3c4   :  { %v794_v26 = vpop.permute.xlu1 %793 }
 0x3c5   :  { %v809_v28 = vsel %vm807_vm2, %v806_v27, %v794_v26 }
 0x3ce   :  { %v802_v29 = vpop.permute.xlu0 %801 }
 0x3cf   :  { %v812_v30 = vsel %vm810_vm3, %v809_v28, %v802_v29 }
 0x3d0   :  { %905 = vmatmul.msk.f32.gmra.mxu1 %vm162_vm0, %v812_v30 }
 0x43b   :  { %v844_v32 = vpop.f32.mrf.mxu1 }
 0x43c   :  { %v845_v33 = vadd.f32 %v933_v31, %v844_v32 }
 0x43e   :  { %850 = vst.msk [vmem:[#allocation14] sm:$0xff] %vm162_vm0, %v845_v33 }
 0x44d   :  { %v847_v34 = vpop.f32.mrf.mxu1 }
 0x44e   :  { %v848_v35 = vadd.f32 %v933_v31, %v847_v34 }
 0x450   :  { %851 = vst.msk [vmem:[#allocation14 + $0x8] sm:$0xff] %vm162_vm0, %v848_v35 }
 0x451   :  { %864 = dma.vmem_to_hbm [thread:$0]  %s857_s19, 256, %s859_s21, [#allocation4], %s1169_s25, %s1169_s25, %s1170_s26  }
 0x452   :  { %1166 = dma.done.wait [#allocation4], 256  }
 0x453   :  { %1167 = vsyncadd [#allocation4], 4294967040 }
 0x454   :  { %869 = vsyncpa [#allocation3], 1 }
 0x455   :  { %870 = vsyncpa [#allocation6], 1 }
 0x456   :  { %871 = vsyncpa [#allocation9], 1 }
 0x457   :  { %872 = vsyncpa [#allocation12], 1 }
 0x458   :  { %873 = vsyncpa [#allocation4], 1 }

// kernel: tpu_custom_call.1
= control target key start
LH: loop header
LB: loop body
LE: loop exit
PB: predicated region body
PF: predicated region fallthrough
CT: control target
= control target key end

     0   :  { %16 = vsyncpa [#allocation3], 0  ;;  %s1386_s0 = inlined_call_operand.hbm [shape: f32[2,8,32], index: 0, kind: input, shape index: {}]   ;;  %s1387_s1 = inlined_call_operand.hbm [shape: f32[2,8,32], index: 1, kind: input, shape index: {}]   ;;  %s1388_s2 = inlined_call_operand.hbm [shape: f32[2,8,32], index: 2, kind: input, shape index: {}]   ;;  %s1389_s3 = inlined_call_operand.hbm [shape: f32[32,32], index: 3, kind: input, shape index: {}]   ;;  %s1390_s4 = inlined_call_operand.vmem [shape: f32[1,32], index: 4, kind: input, shape index: {}]   ;;  %s1391_s5 = inlined_call_operand.hbm [shape: f32[32,32], index: 5, kind: input, shape index: {}]   ;;  %s1392_s6 = inlined_call_operand.vmem [shape: f32[1,32], index: 6, kind: input, shape index: {}]   ;;  %s1393_s7 = inlined_call_operand.hbm [shape: f32[32,32], index: 7, kind: input, shape index: {}]   ;;  %s1394_s8 = inlined_call_operand.vmem [shape: f32[1,32], index: 8, kind: input, shape index: {}]   ;;  %s1395_s9 = inlined_call_operand.hbm [shape: f32[32,32], index: 9, kind: input, shape index: {}]   ;;  %s1396_s10 = inlined_call_operand.vmem [shape: f32[1,32], index: 10, kind: input, shape index: {}]   ;;  %s1397_s11 = inlined_call_operand.hbm [shape: f32[2,8,32], index: 11, kind: output, shape index: {}]  }
   0x1   :  { %17 = vsyncpa [#allocation6], 0 }
   0x2   :  { %18 = vsyncpa [#allocation9], 0 }
   0x3   :  { %19 = vsyncpa [#allocation12], 0 }
   0x4   :  { %20 = vsyncpa [#allocation4], 0  ;;  %s38_s19 = sshll.u32 %s1387_s1, 4  ;;  %s1168_s20 = smov [#allocation5]   ;;  %s39_s19 = int_to_ptr.hbm [resolvable:$true] %s38_s19 }
   0x5   :  { %s40_s21 = sshll.u32 %s1168_s20, 4  ;;  %s64_s24 = sshll.u32 %s1389_s3, 4  ;;  %s41_s21 = int_to_ptr.vmem [resolvable:$true] %s40_s21  ;;  %s65_s24 = int_to_ptr.hbm [resolvable:$true] %s64_s24 }
   0x6   :  { %s1169_s25 = smov 128   ;;  %s1170_s26 = smov 8  }
   0x7   :  { %46 = dma.hbm_to_vmem [thread:$0]  %s39_s19, 256, %s41_s21, [#allocation6], %s1169_s25, %s1169_s25, %s1170_s26  }
   0x8   :  { %s1171_s27 = smov [#allocation8]   ;;  %s94_s1 = sshll.u32 %s1393_s7, 4  ;;  %s95_s1 = int_to_ptr.hbm [resolvable:$true] %s94_s1 }
   0x9   :  { %s66_s28 = sshll.u32 %s1171_s27, 4  ;;  %s25_s13 = sshll.u32 %s1386_s0, 4  ;;  %s67_s28 = int_to_ptr.vmem [resolvable:$true] %s66_s28  ;;  %s26_s13 = int_to_ptr.hbm [resolvable:$true] %s25_s13 }
   0xa   :  { %72 = dma.hbm_to_vmem [thread:$0]  %s65_s24, 512, %s67_s28, [#allocation9], %s1169_s25, %s1169_s25, %s1170_s26  }
   0xb   :  { %s1172_s14 = smov [#allocation11]   ;;  %s1173_s16 = smov [#allocation2]  }
   0xc   :  { %s96_s15 = sshll.u32 %s1172_s14, 4  ;;  %s27_s7 = sshll.u32 %s1173_s16, 4  ;;  %s97_s15 = int_to_ptr.vmem [resolvable:$true] %s96_s15  ;;  %s28_s7 = int_to_ptr.vmem [resolvable:$true] %s27_s7 }
   0xd   :  { %102 = dma.hbm_to_vmem [thread:$0]  %s95_s1, 512, %s97_s15, [#allocation12], %s1169_s25, %s1169_s25, %s1170_s26  }
   0xe   :  { %s51_s19 = sshll.u32 %s1388_s2, 4  ;;  %s79_s21 = sshll.u32 %s1391_s5, 4  ;;  %s52_s19 = int_to_ptr.hbm [resolvable:$true] %s51_s19  ;;  %s80_s21 = int_to_ptr.hbm [resolvable:$true] %s79_s21 }
   0xf   :  { %33 = dma.hbm_to_vmem [thread:$0]  %s26_s13, 256, %s28_s7, [#allocation3], %s1169_s25, %s1169_s25, %s1170_s26  }
  0x10   :  { %s1174_s22 = smov [#allocation7]   ;;  %s1175_s24 = smov [#allocation10]  }
  0x11   :  { %s53_s23 = sshll.u32 %s1174_s22, 4  ;;  %s81_s2 = sshll.u32 %s1175_s24, 4  ;;  %s54_s23 = int_to_ptr.vmem [resolvable:$true] %s53_s23  ;;  %s82_s2 = int_to_ptr.vmem [resolvable:$true] %s81_s2 }
  0x12   :  { %59 = dma.hbm_to_vmem [thread:$0]  %s52_s19, 256, %s54_s23, [#allocation6], %s1169_s25, %s1169_s25, %s1170_s26  }
  0x13   :  { %s109_s29 = sshll.u32 %s1395_s9, 4  ;;  %s1176_s5 = smov [#allocation13]   ;;  %s110_s29 = int_to_ptr.hbm [resolvable:$true] %s109_s29 }
  0x14   :  { %87 = dma.hbm_to_vmem [thread:$0]  %s80_s21, 512, %s82_s2, [#allocation9], %s1169_s25, %s1169_s25, %s1170_s26  }
  0x15   :  { %s111_s30 = sshll.u32 %s1176_s5, 4  ;;  %s112_s30 = int_to_ptr.vmem [resolvable:$true] %s111_s30 }
  0x16   :  { %117 = dma.hbm_to_vmem [thread:$0]  %s110_s29, 512, %s112_s30, [#allocation12], %s1169_s25, %s1169_s25, %s1170_s26  }
  0x17   :  { %1158 = dma.done.wait [#allocation3], 256  }
  0x18   :  { %1159 = vsyncadd [#allocation3], 4294967040 }
  0x19   :  { %1160 = dma.done.wait [#allocation6], 512  }
  0x1a   :  { %1161 = vsyncadd [#allocation6], 4294966784 }
  0x1b   :  { %1162 = dma.done.wait [#allocation9], 1024  }
  0x1c   :  { %1163 = vsyncadd [#allocation9], 4294966272 }
  0x1d   :  { %1164 = dma.done.wait [#allocation12], 1024  }
  0x1e   :  { %1165 = vsyncadd [#allocation12], 4294966272  ;;  %v195_v0 = vld [vmem:[#allocation10 + $0x18] sm:$0xff]  ;;  %v194_v2 = vld [vmem:[#allocation10 + $0x10] sm:$0xff]  ;;  %vm162_vm0 = vcmask 261120   ;;  %vm268_vm1 = vcmask 64512  }
  0x1f   :  { %v157_v1 = vld [vmem:[#allocation8 + $0x18] sm:$0xff]  ;;  %218 = vmatpush.msra.mxu1 %v195_v0  ;;  %v156_v3 = vld [vmem:[#allocation8 + $0x10] sm:$0xff]  ;;  %906 = vmatpush.msra.mxu2 %v195_v0  ;;  %v193_v4 = vld [vmem:[#allocation10 + $0x8] sm:$0xff]  ;;  %s1177_s13 = smov 112   ;;  %s1178_s14 = smov 120   ;;  %vm807_vm2 = vcmask 130048  }
  0x20   :  { %181 = vmatpush.msra.mxu0 %v157_v1  ;;  %v155_v5 = vld [vmem:[#allocation8 + $0x8] sm:$0xff]  ;;  %v192_v6 = vld [vmem:[#allocation10] sm:$0xff]  ;;  %v148_v9 = vld [vmem:[#allocation2] sm:$0xff]  ;;  %s1181_s16 = smov 24   ;;  %vm810_vm3 = vcmask 195584   ;;  %s1182_s18 = smov [#allocation14]  }
  0x21   :  { %219 = vmatpush.msra.mxu1 %v194_v2  ;;  %v154_v7 = vld [vmem:[#allocation8] sm:$0xff]  ;;  %907 = vmatpush.msra.mxu2 %v194_v2  ;;  %v151_v10 = vld [vmem:[#allocation5 + $0x8] sm:$0xff]  ;;  %v149_v11 = vld [vmem:[#allocation2 + $0x8] sm:$0xff]  ;;  %s856_s19 = sshll.u32 %s1182_s18, 4  ;;  %s858_s21 = sshll.u32 %s1397_s11, 4  ;;  %s857_s19 = int_to_ptr.vmem [resolvable:$true] %s856_s19  ;;  %s859_s21 = int_to_ptr.hbm [resolvable:$true] %s858_s21 }
  0x22   :  { %182 = vmatpush.msra.mxu0 %v156_v3  ;;  %v150_v8 = vld [vmem:[#allocation5] sm:$0xff]  ;;  %v930_v12 = vld [vmem:[%s1392_s6] ss:$0 sm:$0xff]  ;;  %v232_v24 = vld [vmem:[#allocation11 + $0x18] sm:$0xff] }
  0x23   :  { %220 = vmatpush.msra.mxu1 %v193_v4  ;;  %908 = vmatpush.msra.mxu2 %v193_v4  ;;  %v931_v13 = vld [vmem:[%s1390_s4] ss:$0 sm:$0xff]  ;;  %s1179_s4 = smov 104   ;;  %v230_v26 = vld [vmem:[#allocation11 + $0x8] sm:$0xff]  ;;  %v229_v27 = vld [vmem:[#allocation11] sm:$0xff] }
  0x24   :  { %183 = vmatpush.msra.mxu0 %v155_v5  ;;  %v231_v25 = vld [vmem:[#allocation11 + $0x10] sm:$0xff]  ;;  %v153_v29 = vld [vmem:[#allocation7 + $0x8] sm:$0xff] }
  0x25   :  { %221 = vmatpush.msra.mxu1 %v192_v6  ;;  %909 = vmatpush.msra.mxu2 %v192_v6  ;;  %v152_v28 = vld [vmem:[#allocation7] sm:$0xff] }
  0x26   :  { %184 = vmatpush.msra.mxu0 %v154_v7  ;;  %876 = vmatmul.msk.f32.vlgmr.msra.gmra.mxu1 %vm162_vm0, %v150_v8  ;;  %v932_v46 = vld [vmem:[%s1394_s8] ss:$0 sm:$0xff]  ;;  %s1180_s8 = smov 16  }
  0x27   :  { %874 = vmatmul.msk.f32.vlgmr.msra.gmra.mxu0 %vm162_vm0, %v148_v9  ;;  %877 = vmatmul.msk.f32.vlgmr.msra.gmra.mxu2 %vm162_vm0, %v151_v10 }
  0x28   :  { %255 = vmatpush.msrb.mxu2 %v232_v24 }
  0x2a   :  { %256 = vmatpush.msrb.mxu2 %v231_v25 }
  0x2c   :  { %257 = vmatpush.msrb.mxu2 %v230_v26 }
  0x2e   :  { %258 = vmatpush.msrb.mxu2 %v229_v27 }
  0x2f   :  { %875 = vmatmul.msk.f32.gmra.mxu0 %vm162_vm0, %v149_v11  ;;  %878 = vmatmul.msk.f32.vlgmr.msrb.gmra.mxu2 %vm162_vm0, %v152_v28 }
  0x37   :  { %879 = vmatmul.msk.f32.gmra.mxu2 %vm162_vm0, %v153_v29 }
  0xa3   :  { %v223_v14 = vpop.f32.mrf.mxu1 }
  0xa4   :  { %v186_v15 = vpop.f32.mrf.mxu0  ;;  %v224_v16 = vadd.f32 %v930_v12, %v223_v14 }
  0xa5   :  { %v187_v17 = vadd.f32 %v931_v13, %v186_v15 }
  0xa6   :  { %523 = vrot.lane.b32.xlu1 %v224_v16, %s1177_s13  ;;  %391 = vrot.lane.b32.xlu0 %v224_v16, %s1178_s14 }
  0xa7   :  { %v266_v18 = vmul.f32 0.35355338, %v187_v17  ;;  %880 = vmatpush.xpose.msk.msra.mxu3 %vm268_vm1, %v224_v16 }
  0xa9   :  { %521 = vrot.lane.b32.xlu2 %v266_v18, %s1177_s13 }
  0xaa   :  { %881 = vmatmul.msk.f32.vlgmr.msra.gmra.mxu3 %vm268_vm1, %v266_v18  ;;  %v226_v19 = vpop.f32.mrf.mxu2 }
  0xab   :  { %v227_v21 = vadd.f32 %v930_v12, %v226_v19 }
  0xac   :  { %v189_v20 = vpop.f32.mrf.mxu0 }
  0xad   :  { %v190_v22 = vadd.f32 %v931_v13, %v189_v20  ;;  %882 = vmatpush.xpose.msk.msrb.mxu3 %vm268_vm1, %v227_v21 }
  0xae   :  { %419 = vrot.lane.b32.xlu1 %v227_v21, %s1178_s14  ;;  %389 = vrot.lane.b32.xlu0 %v266_v18, %s1178_s14 }
  0xaf   :  { %v267_v23 = vmul.f32 0.35355338, %v190_v22 }
  0xb1   :  { %417 = vrot.lane.b32.xlu2 %v267_v23, %s1178_s14 }
  0xb2   :  { %883 = vmatmul.msk.f32.vlgmr.msrb.gmra.mxu3 %vm268_vm1, %v267_v23  ;;  %v260_v47 = vpop.f32.mrf.mxu2 }
  0xb3   :  { %v1330_v48 = vadd.f32 %v932_v46, %v260_v47 }
  0xb5   :  { %361 = vmatpush.msra.mxu3 %v1330_v48 }
  0xb6   :  { %653 = vrot.lane.b32.xlu1 %v224_v16, %s1179_s4  ;;  %551 = vrot.lane.b32.xlu0 %v227_v21, %s1177_s13 }
  0xb9   :  { %549 = vrot.lane.b32.xlu2 %v267_v23, %s1177_s13 }
  0xba   :  { %v263_v49 = vpop.f32.mrf.mxu2 }
  0xbb   :  { %v1333_v50 = vadd.f32 %v932_v46, %v263_v49 }
  0xbd   :  { %384 = vmatpush.msrb.mxu0 %v1333_v50 }
  0xbe   :  { %681 = vrot.lane.b32.xlu1 %v227_v21, %s1179_s4  ;;  %651 = vrot.lane.b32.xlu0 %v266_v18, %s1179_s4 }
  0xc1   :  { %679 = vrot.lane.b32.xlu2 %v267_v23, %s1179_s4 }
 0x103   :  { %v522_v30 = vpop.permute.xlu2 %521 }
 0x10b   :  { %v418_v33 = vpop.permute.xlu2 %417 }
 0x113   :  { %v550_v38 = vpop.permute.xlu2 %549 }
 0x118   :  { %v524_v31 = vpop.permute.xlu1 %523  ;;  %v392_v32 = vpop.permute.xlu0 %391 }
 0x119   :  { %886 = vmatpush.xpose.msk.msrb.mxu1 %vm268_vm1, %v392_v32 }
 0x11b   :  { %v680_v43 = vpop.permute.xlu2 %679 }
 0x11d   :  { %892 = vmatpush.xpose.msk.msra.mxu1 %vm268_vm1, %v524_v31 }
 0x120   :  { %v420_v34 = vpop.permute.xlu1 %419  ;;  %v390_v35 = vpop.permute.xlu0 %389 }
 0x121   :  { %888 = vmatpush.xpose.msk.msra.mxu2 %vm268_vm1, %v420_v34  ;;  %887 = vmatmul.msk.f32.vlgmr.msrb.gmra.mxu1 %vm268_vm1, %v390_v35 }
 0x124   :  { %889 = vmatmul.msk.f32.vlgmr.msra.gmra.mxu2 %vm268_vm1, %v418_v33 }
 0x128   :  { %v654_v36 = vpop.permute.xlu1 %653  ;;  %v552_v37 = vpop.permute.xlu0 %551 }
 0x129   :  { %898 = vmatpush.xpose.msk.msrb.mxu1 %vm268_vm1, %v654_v36  ;;  %894 = vmatpush.xpose.msk.msrb.mxu2 %vm268_vm1, %v552_v37 }
 0x12a   :  { %893 = vmatmul.msk.f32.vlgmr.msra.gmra.mxu1 %vm268_vm1, %v522_v30 }
 0x12c   :  { %895 = vmatmul.msk.f32.vlgmr.msrb.gmra.mxu2 %vm268_vm1, %v550_v38 }
 0x12d   :  { %v292_v39 = vpop.f32.mrf.mxu3 }
 0x12e   :  { %v321_v40 = vsel %vm268_vm1, %v292_v39, -inf }
 0x12f   :  { %322 = vmax.xlane.f32.xlu0 %v321_v40 }
 0x130   :  { %v682_v41 = vpop.permute.xlu1 %681  ;;  %v652_v42 = vpop.permute.xlu0 %651 }
 0x131   :  { %900 = vmatpush.xpose.msk.msra.mxu2 %vm268_vm1, %v682_v41 }
 0x132   :  { %899 = vmatmul.msk.f32.vlgmr.msrb.gmra.mxu1 %vm268_vm1, %v652_v42 }
 0x134   :  { %901 = vmatmul.msk.f32.vlgmr.msra.gmra.mxu2 %vm268_vm1, %v680_v43 }
 0x135   :  { %v318_v44 = vpop.f32.mrf.mxu3 }
 0x136   :  { %v324_v45 = vsel %vm268_vm1, %v318_v44, -inf }
 0x137   :  { %325 = vmax.xlane.f32.xlu2 %v324_v45 }
 0x19e   :  { %v414_v51 = vpop.f32.mrf.mxu1 }
 0x19f   :  { %v445_v52 = vsel %vm268_vm1, %v414_v51, -inf }
 0x1a0   :  { %446 = vmax.xlane.f32.xlu1 %v445_v52 }
 0x1a2   :  { %v323_v53 = vpop.xlane.xlu0 %322 }
 0x1a3   :  { %v327_v54 = vsub.f32 %v292_v39, %v323_v53  ;;  %v925_v39 = vpack.i.bf16 %v1333_v50, %v1330_v48 }
 0x1a5   :  { %v329_v59 = vmul.f32 1.442695, %v327_v54 }
 0x1a7   :  { %v546_v55 = vpop.f32.mrf.mxu1  ;;  %v442_v56 = vpop.f32.mrf.mxu2  ;;  %934 = vpow2.f32 %v329_v59 }
 0x1a8   :  { %v577_v57 = vsel %vm268_vm1, %v546_v55, -inf  ;;  %v448_v58 = vsel %vm268_vm1, %v442_v56, -inf }
 0x1a9   :  { %578 = vmax.xlane.f32.xlu2 %v577_v57  ;;  %449 = vmax.xlane.f32.xlu0 %v448_v58 }
 0x1aa   :  { %v326_v60 = vpop.xlane.xlu2 %325 }
 0x1ab   :  { %v328_v61 = vsub.f32 %v318_v44, %v326_v60 }
 0x1ad   :  { %v331_v62 = vmul.f32 1.442695, %v328_v61  ;;  %v935_v3 = vpop.eup %934 }
 0x1ae   :  { %v333_v6 = vsel %vm268_vm1, %v935_v3, 0.0 }
 0x1af   :  { %936 = vpow2.f32 %v331_v62  ;;  %v676_v63 = vpop.f32.mrf.mxu1  ;;  %v574_v0 = vpop.f32.mrf.mxu2 }
 0x1b0   :  { %v707_v1 = vsel %vm268_vm1, %v676_v63, -inf  ;;  %v580_v2 = vsel %vm268_vm1, %v574_v0, -inf }
 0x1b1   :  { %708 = vmax.xlane.f32.xlu1 %v707_v1  ;;  %581 = vmax.xlane.f32.xlu2 %v580_v2 }
 0x1b5   :  { %v937_v4 = vpop.eup %936 }
 0x1b6   :  { %v336_v5 = vsel %vm268_vm1, %v937_v4, 0.0 }
 0x1b7   :  { %337 = vadd.xlane.f32.xlu0 %v336_v5  ;;  %v704_v7 = vpop.f32.mrf.mxu2 }
 0x1b8   :  { %v710_v8 = vsel %vm268_vm1, %v704_v7, -inf }
 0x1b9   :  { %334 = vadd.xlane.f32.xlu1 %v333_v6 }
 0x1bf   :  { %711 = vmax.xlane.f32.xlu0 %v710_v8 }
 0x1d3   :  { %599 = vrot.lane.b32.xlu0 %v1330_v48, %s1177_s13 }
 0x213   :  { %v447_v9 = vpop.xlane.xlu1 %446 }
 0x214   :  { %v451_v10 = vsub.f32 %v414_v51, %v447_v9 }
 0x216   :  { %v453_v11 = vmul.f32 1.442695, %v451_v10 }
 0x218   :  { %938 = vpow2.f32 %v453_v11 }
 0x21c   :  { %v579_v12 = vpop.xlane.xlu2 %578  ;;  %v450_v13 = vpop.xlane.xlu0 %449 }
 0x21d   :  { %v583_v14 = vsub.f32 %v546_v55, %v579_v12  ;;  %v452_v15 = vsub.f32 %v442_v56, %v450_v13 }
 0x21e   :  { %v939_v16 = vpop.eup %938 }
 0x21f   :  { %v585_v17 = vmul.f32 1.442695, %v583_v14  ;;  %v455_v18 = vmul.f32 1.442695, %v452_v15  ;;  %v457_v19 = vsel %vm268_vm1, %v939_v16, 0.0  ;;  %v816_v15 = vld [vmem:[#allocation13 + $0x18] sm:$0xff] }
 0x220   :  { %458 = vadd.xlane.f32.xlu2 %v457_v19  ;;  %839 = vmatpush.msra.mxu1 %v816_v15 }
 0x221   :  { %940 = vpow2.f32 %v585_v17  ;;  %v814_v17 = vld [vmem:[#allocation13 + $0x8] sm:$0xff] }
 0x222   :  { %942 = vpow2.f32 %v455_v18  ;;  %v813_v18 = vld [vmem:[#allocation13] sm:$0xff] }
 0x224   :  { %v709_v20 = vpop.xlane.xlu1 %708  ;;  %v582_v22 = vpop.xlane.xlu2 %581 }
 0x225   :  { %v713_v21 = vsub.f32 %v676_v63, %v709_v20  ;;  %v584_v25 = vsub.f32 %v574_v0, %v582_v22 }
 0x227   :  { %v941_v23 = vpop.eup %940  ;;  %v715_v24 = vmul.f32 1.442695, %v713_v21  ;;  %v587_v30 = vmul.f32 1.442695, %v584_v25 }
 0x228   :  { %v943_v26 = vpop.eup %942  ;;  %v589_v27 = vsel %vm268_vm1, %v941_v23, 0.0 }
 0x229   :  { %944 = vpow2.f32 %v715_v24  ;;  %590 = vadd.xlane.f32.xlu1 %v589_v27  ;;  %v460_v28 = vsel %vm268_vm1, %v943_v26, 0.0 }
 0x22a   :  { %461 = vadd.xlane.f32.xlu0 %v460_v28  ;;  %v338_v29 = vpop.xlane.xlu0 %337 }
 0x22b   :  { %946 = vrcp.f32 %v338_v29 }
 0x22c   :  { %v335_v31 = vpop.xlane.xlu1 %334 }
 0x22d   :  { %948 = vrcp.f32 %v335_v31  ;;  %v933_v31 = vld [vmem:[%s1396_s10] ss:$0 sm:$0xff] }
 0x22e   :  { %950 = vpow2.f32 %v587_v30 }
 0x22f   :  { %v945_v32 = vpop.eup %944 }
 0x230   :  { %v719_v33 = vsel %vm268_vm1, %v945_v32, 0.0 }
 0x231   :  { %v947_v34 = vpop.eup %946  ;;  %720 = vadd.xlane.f32.xlu1 %v719_v33 }
 0x232   :  { %v342_v35 = vmul.f32 %v947_v34, %v937_v4  ;;  %v712_v41 = vpop.xlane.xlu0 %711 }
 0x233   :  { %v949_v36 = vpop.eup %948  ;;  %v714_v42 = vsub.f32 %v704_v7, %v712_v41 }
 0x234   :  { %v341_v37 = vmul.f32 %v949_v36, %v935_v3  ;;  %885 = vmatmul.msk.f32.vlgmr.msrb.gmra.mxu0 %vm268_vm1, %v342_v35  ;;  %v951_v38 = vpop.eup %950 }
 0x235   :  { %v592_v40 = vsel %vm268_vm1, %v951_v38, 0.0  ;;  %v717_v43 = vmul.f32 1.442695, %v714_v42 }
 0x236   :  { %884 = vmatmul.msk.f32.vlgmr.msra.gmra.mxu3 %vm268_vm1, %v341_v37 }
 0x237   :  { %952 = vpow2.f32 %v717_v43 }
 0x238   :  { %926 = vrot.lane.b32.xlu2 %v925_v39, %s1178_s14 }
 0x239   :  { %593 = vadd.xlane.f32.xlu1 %v592_v40 }
 0x23d   :  { %v953_v44 = vpop.eup %952 }
 0x23e   :  { %625 = vrot.lane.b32.xlu0 %v1333_v50, %s1177_s13  ;;  %v722_v45 = vsel %vm268_vm1, %v953_v44, 0.0 }
 0x245   :  { %v600_v47 = vpop.permute.xlu0 %599 }
 0x246   :  { %755 = vrot.lane.b32.xlu0 %v1333_v50, %s1179_s4 }
 0x252   :  { %729 = vrot.lane.b32.xlu1 %v1330_v48, %s1179_s4 }
 0x261   :  { %723 = vadd.xlane.f32.xlu2 %v722_v45 }
 0x293   :  { %v459_v46 = vpop.xlane.xlu2 %458 }
 0x294   :  { %954 = vrcp.f32 %v459_v46 }
 0x29a   :  { %v955_v49 = vpop.eup %954 }
 0x29b   :  { %v927_v52 = vpop.permute.xlu2 %926  ;;  %v465_v55 = vmul.f32 %v955_v49, %v939_v16  ;;  %v815_v16 = vld [vmem:[#allocation13 + $0x10] sm:$0xff] }
 0x29c   :  { %v591_v51 = vpop.xlane.xlu1 %590  ;;  %v929_v53 = vunpack.i.h.bf16 %v927_v52  ;;  %v928_v50 = vunpack.i.l.bf16 %v927_v52  ;;  %840 = vmatpush.msra.mxu1 %v815_v16 }
 0x29d   :  { %956 = vrcp.f32 %v591_v51  ;;  %v462_v54 = vpop.xlane.xlu0 %461 }
 0x29e   :  { %958 = vrcp.f32 %v462_v54  ;;  %489 = vmatpush.msrb.mxu3 %v928_v50  ;;  %516 = vmatpush.msra.mxu0 %v929_v53 }
 0x29f   :  { %890 = vmatmul.msk.f32.vlgmr.msrb.gmra.mxu3 %vm268_vm1, %v465_v55  ;;  %841 = vmatpush.msra.mxu1 %v814_v17 }
 0x2a0   :  { %620 = vmatpush.msra.mxu3 %v600_v47 }
 0x2a1   :  { %842 = vmatpush.msra.mxu1 %v813_v18 }
 0x2a3   :  { %v957_v48 = vpop.eup %956 }
 0x2a4   :  { %v959_v56 = vpop.eup %958  ;;  %v721_v57 = vpop.xlane.xlu1 %720  ;;  %v597_v59 = vmul.f32 %v957_v48, %v941_v23 }
 0x2a5   :  { %v466_v58 = vmul.f32 %v959_v56, %v943_v26 }
 0x2a7   :  { %891 = vmatmul.msk.f32.vlgmr.msra.gmra.mxu0 %vm268_vm1, %v466_v58  ;;  %896 = vmatmul.msk.f32.vlgmr.msra.gmra.mxu3 %vm268_vm1, %v597_v59 }
 0x2ac   :  { %v594_v60 = vpop.xlane.xlu1 %593 }
 0x2ad   :  { %960 = vrcp.f32 %v594_v60 }
 0x2ae   :  { %962 = vrcp.f32 %v721_v57 }
 0x2b0   :  { %v626_v61 = vpop.permute.xlu0 %625 }
 0x2b1   :  { %646 = vmatpush.msrb.mxu0 %v626_v61  ;;  %v386_v9 = vpop.f32.mrf.mxu0 }
 0x2b3   :  { %v961_v62 = vpop.eup %960 }
 0x2b4   :  { %v598_v63 = vmul.f32 %v961_v62, %v951_v38  ;;  %v963_v1 = vpop.eup %962 }
 0x2b5   :  { %v727_v2 = vmul.f32 %v963_v1, %v945_v32 }
 0x2b6   :  { %897 = vmatmul.msk.f32.vlgmr.msrb.gmra.mxu0 %vm268_vm1, %v598_v63 }
 0x2b8   :  { %v756_v0 = vpop.permute.xlu0 %755 }
 0x2b9   :  { %776 = vmatpush.msra.mxu0 %v756_v0  ;;  %v363_v7 = vpop.f32.mrf.mxu3 }
 0x2c4   :  { %v730_v3 = vpop.permute.xlu1 %729 }
 0x2c5   :  { %750 = vmatpush.msrb.mxu3 %v730_v3 }
 0x2c6   :  { %902 = vmatmul.msk.f32.vlgmr.msrb.gmra.mxu3 %vm268_vm1, %v727_v2 }
 0x2d4   :  { %v724_v4 = vpop.xlane.xlu2 %723 }
 0x2d5   :  { %964 = vrcp.f32 %v724_v4 }
 0x2db   :  { %v965_v5 = vpop.eup %964 }
 0x2dc   :  { %v728_v6 = vmul.f32 %v965_v5, %v953_v44 }
 0x2de   :  { %903 = vmatmul.msk.f32.vlgmr.msra.gmra.mxu0 %vm268_vm1, %v728_v6 }
 0x322   :  { %v491_v8 = vpop.f32.mrf.mxu3 }
 0x323   :  { %783 = vrot.lane.b32.xlu1 %v491_v8, %s1170_s26 }
 0x324   :  { %v518_v11 = vpop.f32.mrf.mxu0 }
 0x32a   :  { %v622_v10 = vpop.f32.mrf.mxu3 }
 0x32b   :  { %791 = vrot.lane.b32.xlu0 %v622_v10, %s1180_s8 }
 0x333   :  { %785 = vrot.lane.b32.xlu0 %v518_v11, %s1170_s26  ;;  %v648_v13 = vpop.f32.mrf.mxu0 }
 0x349   :  { %v752_v12 = vpop.f32.mrf.mxu3 }
 0x34a   :  { %799 = vrot.lane.b32.xlu1 %v752_v12, %s1181_s16 }
 0x352   :  { %793 = vrot.lane.b32.xlu1 %v648_v13, %s1180_s8 }
 0x35b   :  { %v778_v14 = vpop.f32.mrf.mxu0 }
 0x35c   :  { %801 = vrot.lane.b32.xlu0 %v778_v14, %s1181_s16 }
 0x395   :  { %v784_v19 = vpop.permute.xlu1 %783 }
 0x396   :  { %v805_v21 = vsel %vm268_vm1, %v363_v7, %v784_v19 }
 0x39d   :  { %v792_v20 = vpop.permute.xlu0 %791 }
 0x39e   :  { %v808_v22 = vsel %vm807_vm2, %v805_v21, %v792_v20 }
 0x3a5   :  { %v786_v25 = vpop.permute.xlu0 %785 }
 0x3a6   :  { %v806_v27 = vsel %vm268_vm1, %v386_v9, %v786_v25 }
 0x3bc   :  { %v800_v23 = vpop.permute.xlu1 %799 }
 0x3bd   :  { %v811_v24 = vsel %vm810_vm3, %v808_v22, %v800_v23 }
 0x3be   :  { %904 = vmatmul.msk.f32.vlgmr.msra.gmra.mxu1 %vm162_vm0, %v811_v24 }
 0x3c4   :  { %v794_v26 = vpop.permute.xlu1 %793 }
 0x3c5   :  { %v809_v28 = vsel %vm807_vm2, %v806_v27, %v794_v26 }
 0x3ce   :  { %v802_v29 = vpop.permute.xlu0 %801 }
 0x3cf   :  { %v812_v30 = vsel %vm810_vm3, %v809_v28, %v802_v29 }
 0x3d0   :  { %905 = vmatmul.msk.f32.gmra.mxu1 %vm162_vm0, %v812_v30 }
 0x43b   :  { %v844_v32 = vpop.f32.mrf.mxu1 }
 0x43c   :  { %v845_v33 = vadd.f32 %v933_v31, %v844_v32 }
 0x43e   :  { %850 = vst.msk [vmem:[#allocation14] sm:$0xff] %vm162_vm0, %v845_v33 }
 0x44d   :  { %v847_v34 = vpop.f32.mrf.mxu1 }
 0x44e   :  { %v848_v35 = vadd.f32 %v933_v31, %v847_v34 }
 0x450   :  { %851 = vst.msk [vmem:[#allocation14 + $0x8] sm:$0xff] %vm162_vm0, %v848_v35 }
 0x451   :  { %864 = dma.vmem_to_hbm [thread:$0]  %s857_s19, 256, %s859_s21, [#allocation4], %s1169_s25, %s1169_s25, %s1170_s26  }
 0x452   :  { %1166 = dma.done.wait [#allocation4], 256  }
 0x453   :  { %1167 = vsyncadd [#allocation4], 4294967040 }
 0x454   :  { %869 = vsyncpa [#allocation3], 1 }
 0x455   :  { %870 = vsyncpa [#allocation6], 1 }
 0x456   :  { %871 = vsyncpa [#allocation9], 1 }
 0x457   :  { %872 = vsyncpa [#allocation12], 1 }
 0x458   :  { %873 = vsyncpa [#allocation4], 1 }

</bundles_post_ra>
